<compile_context>
chip_gen: v7x
topology: tpu7x:2x2x1
jax: 0.10.0
libtpu: 0.0.40
codegen_flags: <defaults>
</compile_context>

<pallas_src>
import functools

import jax
import jax.numpy as jnp
import numpy as np
from jax.experimental import pallas as pl
from jax.experimental.pallas import tpu as pltpu

# --- static shapes (10x10 MicroRTS map: 32*3*3 flatten => 10x10 input) ---
C_IN, H_IN = 27, 10
C1, K1, S1 = 16, 3, 2          # conv1
C2, K2 = 32, 2                 # conv2
H1 = (H_IN - K1) // S1 + 1     # 4
H2 = H1 - K2 + 1               # 3
X_DIM = C_IN * H_IN * H_IN     # 2700 flattened NCHW input
H1_DIM = C1 * H1 * H1          # 256  flattened conv1 output, (c,h,w) order
FLAT = C2 * H2 * H2            # 288 == 32*3*3 flattened conv2 output
HID = 128
NVEC = (100, 6, 4, 4, 4, 4, 7, 49)   # gym-microrts 10x10 action space nvec
A = sum(NVEC)                  # 178 == env.action_space.nvec.sum()
A_PAD = 256                    # lane-pad 178 -> 256 (dense output store)
BIAS_W = 384                   # lane width of the packed bias array


def qnetwork_kernel(x_ref, w1_ref, w2_ref, w3_ref, w4_ref, b_ref, out_ref):
    b = b_ref[...]                                       # (4, 384) f32
    x = x_ref[...].astype(jnp.bfloat16)                  # (bb, 2700)

    # conv1 as a dense GEMM: (bb,2700) @ (2700,256)
    h1 = jnp.dot(x, w1_ref[...], preferred_element_type=jnp.float32)
    h1 = jnp.maximum(h1 + b[0:1, :H1_DIM], 0.0)          # (bb, 256) f32

    # conv2 as a dense GEMM: (bb,256) @ (256,288)
    h2 = jnp.dot(h1.astype(jnp.bfloat16), w2_ref[...],
                 preferred_element_type=jnp.float32)
    h2 = jnp.maximum(h2 + b[1:2, :FLAT], 0.0)            # (bb, 288) f32

    # fc1: (bb,288) @ (288,128)
    h3 = jnp.dot(h2.astype(jnp.bfloat16), w3_ref[...],
                 preferred_element_type=jnp.float32)
    h3 = jnp.maximum(h3 + b[2:3, :HID], 0.0)             # (bb, 128) f32

    # fc2 head: (bb,128) @ (128,256) -- lane-dense padded store
    out = jnp.dot(h3.astype(jnp.bfloat16), w4_ref[...],
                  preferred_element_type=jnp.float32)
    out_ref[...] = out + b[3:4, :A_PAD]                  # (bb, 256) f32


def _selector(n_in, n_out, k, stride):
    """S[i, o, t] = 1.0 iff i == o*stride + t  (numpy trace-time constant)."""
    i = np.arange(n_in)[:, None, None]
    o = np.arange(n_out)[None, :, None]
    t = np.arange(k)[None, None, :]
    return (i == o * stride + t).astype(np.float32)


_S1 = _selector(H_IN, H1, K1, S1)   # (10, 4, 3)
_S2 = _selector(H1, H2, K2, 1)      # (4, 3, 2)


def _dense_conv(w, sel):
    """Unfold a conv weight (co,ci,kh,kw) into a dense (in,out) matrix.

    Rows are the flattened (ci, ih, iw) input, columns the flattened
    (co, oh, ow) output -- both in PyTorch NCHW flatten order."""
    sel = jnp.asarray(sel)
    d = jnp.einsum('oikl,hak,wbl->ihwoab', w, sel, sel)
    n_in = w.shape[1] * sel.shape[0] ** 2
    n_out = w.shape[0] * sel.shape[1] ** 2
    return d.reshape(n_in, n_out)


def _pick_block_b(b_total, max_block=128):
    """Batch tile: multiple of 8, capped at max_block, preferring a divisor of
    the batch with >=2 grid steps (both v7x TensorCores get work)."""
    if b_total <= 8:
        return 8
    best = 8
    for bb in range(8, min(max_block, b_total // 2) + 1, 8):
        if b_total % bb == 0:
            best = bb
    return best


@functools.partial(jax.jit, static_argnames=("block_b",))
def qnetwork_forward(x, params, block_b=None):
    w1, b1, w2, b2, w3, b3, w4, b4 = params
    b_total = x.shape[0]
    if block_b is None:
        block_b = _pick_block_b(b_total)
    nb = pl.cdiv(b_total, block_b)
    b_pad = nb * block_b

    # Flattened NCHW input view (free reshape); the kernel reads it directly.
    x_flat = x.reshape(b_total, X_DIM)
    if b_pad != b_total:
        x_flat = jnp.pad(x_flat, ((0, b_pad - b_total), (0, 0)))

    # Dense unfolded conv weights and FC weights, all (in, out), bf16.
    w1d = _dense_conv(w1, _S1).astype(jnp.bfloat16)                      # (2700, 256)
    w2d = _dense_conv(w2, _S2).astype(jnp.bfloat16)                      # (256, 288)
    w3m = w3.T.astype(jnp.bfloat16)                                      # (288, 128)
    w4m = jnp.pad(w4.T, ((0, 0), (0, A_PAD - A))).astype(jnp.bfloat16)   # (128, 256)

    # All biases packed into a single (4, 384) array -> one input / one DMA.
    def _row(v):
        return jnp.pad(v, (0, BIAS_W - v.shape[0]))
    b_pack = jnp.stack([
        _row(jnp.repeat(b1, H1 * H1)),        # conv1 bias over (c,h,w): 256
        _row(jnp.repeat(b2, H2 * H2)),        # conv2 bias over (c,h,w): 288
        _row(b3),                             # 128
        _row(jnp.pad(b4, (0, A_PAD - A))),    # 178 -> 256
    ]).astype(jnp.float32)

    out = pl.pallas_call(
        qnetwork_kernel,
        grid=(nb,),
        out_shape=jax.ShapeDtypeStruct((b_pad, A_PAD), jnp.float32),
        in_specs=[
            pl.BlockSpec((block_b, X_DIM), lambda i: (i, 0)),
            pl.BlockSpec((X_DIM, H1_DIM), lambda i: (0, 0)),   # resident weights
            pl.BlockSpec((H1_DIM, FLAT), lambda i: (0, 0)),
            pl.BlockSpec((FLAT, HID), lambda i: (0, 0)),
            pl.BlockSpec((HID, A_PAD), lambda i: (0, 0)),
            pl.BlockSpec((4, BIAS_W), lambda i: (0, 0)),
        ],
        out_specs=pl.BlockSpec((block_b, A_PAD), lambda i: (i, 0)),
        compiler_params=pltpu.CompilerParams(
            dimension_semantics=("parallel",)),
    )(x_flat, w1d, w2d, w3m, w4m, b_pack)

    return out[:b_total, :A]


def reference_forward(x, params):
    """Pure-JAX f32 reference with exact PyTorch NCHW semantics."""
    w1, b1, w2, b2, w3, b3, w4, b4 = params
    dn = ("NCHW", "OIHW", "NCHW")
    y = jax.lax.conv_general_dilated(x, w1, (S1, S1), "VALID",
                                     dimension_numbers=dn)
    y = jnp.maximum(y + b1[None, :, None, None], 0.0)
    y = jax.lax.conv_general_dilated(y, w2, (1, 1), "VALID",
                                     dimension_numbers=dn)
    y = jnp.maximum(y + b2[None, :, None, None], 0.0)
    y = y.reshape(x.shape[0], -1)              # PyTorch flatten: (c,h,w)
    y = jnp.maximum(y @ w3.T + b3, 0.0)
    return y @ w4.T + b4


def init_params(key):
    ks = jax.random.split(key, 8)
    w1 = jax.random.normal(ks[0], (C1, C_IN, K1, K1), jnp.float32) * 0.1
    b1 = jax.random.normal(ks[1], (C1,), jnp.float32) * 0.01
    w2 = jax.random.normal(ks[2], (C2, C1, K2, K2), jnp.float32) * 0.1
    b2 = jax.random.normal(ks[3], (C2,), jnp.float32) * 0.01
    w3 = jax.random.normal(ks[4], (HID, FLAT), jnp.float32) * 0.05
    b3 = jax.random.normal(ks[5], (HID,), jnp.float32) * 0.01
    w4 = jax.random.normal(ks[6], (A, HID), jnp.float32) * 0.01   # std=0.01 head
    b4 = jax.random.normal(ks[7], (A,), jnp.float32) * 0.01
    return (w1, b1, w2, b2, w3, b3, w4, b4)


# TODO(synk): get_action's Categorical masking/argmax is policy glue outside
# the forward hot path and is not implemented here.

if __name__ == "__main__":
    key = jax.random.PRNGKey(0)
    kx, kp = jax.random.split(key)
    B = 16                                     # e.g. 16 vectorized envs
    x = jax.random.normal(kx, (B, C_IN, H_IN, H_IN), jnp.float32)
    params = init_params(kp)

    out = qnetwork_forward(x, params)
    out = jax.block_until_ready(out)
    assert out.shape == (B, A) and out.dtype == jnp.float32

    ref = reference_forward(x, params)
    # bf16 matmul operands with f32 accumulation: loosened tolerance vs f32 ref.
    assert jnp.allclose(out, ref, atol=2e-2, rtol=2e-2), "mismatch vs reference"

    print("KERNEL_OK")
</pallas_src>

<mosaic_0001>
module attributes {stable_mosaic.version = 11 : i64} {
  func.func @qnetwork_kernel(%arg0: i32, %arg1: memref<8x2700xf32, #tpu.memory_space<vmem>>, %arg2: memref<2700x256xbf16, #tpu.memory_space<vmem>>, %arg3: memref<256x288xbf16, #tpu.memory_space<vmem>>, %arg4: memref<288x128xbf16, #tpu.memory_space<vmem>>, %arg5: memref<128x256xbf16, #tpu.memory_space<vmem>>, %arg6: memref<4x384xf32, #tpu.memory_space<vmem>>, %arg7: memref<8x256xf32, #tpu.memory_space<vmem>>) attributes {dimension_semantics = [#tpu.dimension_semantics<parallel>], iteration_bounds = array<i64: 2>, scalar_prefetch = 0 : i64, scratch_operands = 0 : i64, tpu.core_type = #tpu.core_type<tc>, window_params = [{transform_indices = @transform_0, window_bounds = array<i64: 8, 2700>}, {pipeline_mode = #tpu.pipeline_mode<synchronous>, transform_indices = @transform_1, window_bounds = array<i64: 2700, 256>}, {pipeline_mode = #tpu.pipeline_mode<synchronous>, transform_indices = @transform_2, window_bounds = array<i64: 256, 288>}, {pipeline_mode = #tpu.pipeline_mode<synchronous>, transform_indices = @transform_3, window_bounds = array<i64: 288, 128>}, {pipeline_mode = #tpu.pipeline_mode<synchronous>, transform_indices = @transform_4, window_bounds = array<i64: 128, 256>}, {pipeline_mode = #tpu.pipeline_mode<synchronous>, transform_indices = @transform_5, window_bounds = array<i64: 4, 384>}, {transform_indices = @transform_6, window_bounds = array<i64: 8, 256>}]} {
    %c0 = arith.constant 0 : index
    %c0_0 = arith.constant 0 : index
    %0 = vector.load %arg6[%c0, %c0_0] : memref<4x384xf32, #tpu.memory_space<vmem>>, vector<4x384xf32>
    %c0_1 = arith.constant 0 : index
    %c0_2 = arith.constant 0 : index
    %1 = vector.load %arg1[%c0_1, %c0_2] : memref<8x2700xf32, #tpu.memory_space<vmem>>, vector<8x2700xf32>
    %2 = arith.truncf %1 : vector<8x2700xf32> to vector<8x2700xbf16>
    %c0_3 = arith.constant 0 : index
    %c0_4 = arith.constant 0 : index
    %3 = vector.load %arg2[%c0_3, %c0_4] : memref<2700x256xbf16, #tpu.memory_space<vmem>>, vector<2700x256xbf16>
    %cst = arith.constant dense<0.000000e+00> : vector<8x256xf32>
    %4 = tpu.matmul %2, %3, %cst {dimension_numbers = #tpu.dot_dimension_numbers<[1], [0], [0], [1], [0, 0, 1, 1], [], []>} : vector<8x2700xbf16>, vector<2700x256xbf16>, vector<8x256xf32> -> vector<8x256xf32>
    %5 = vector.extract_strided_slice %0 {offsets = [0, 0], sizes = [1, 256], strides = [1, 1]} : vector<4x384xf32> to vector<1x256xf32>
    %6 = vector.broadcast %5 : vector<1x256xf32> to vector<8x256xf32>
    %7 = arith.addf %4, %6 : vector<8x256xf32>
    %cst_5 = arith.constant 0.000000e+00 : f32
    %8 = vector.broadcast %cst_5 : f32 to vector<8x256xf32>
    %9 = arith.maximumf %7, %8 : vector<8x256xf32>
    %10 = arith.truncf %9 : vector<8x256xf32> to vector<8x256xbf16>
    %c0_6 = arith.constant 0 : index
    %c0_7 = arith.constant 0 : index
    %11 = vector.load %arg3[%c0_6, %c0_7] : memref<256x288xbf16, #tpu.memory_space<vmem>>, vector<256x288xbf16>
    %cst_8 = arith.constant dense<0.000000e+00> : vector<8x288xf32>
    %12 = tpu.matmul %10, %11, %cst_8 {dimension_numbers = #tpu.dot_dimension_numbers<[1], [0], [0], [1], [0, 0, 1, 1], [], []>} : vector<8x256xbf16>, vector<256x288xbf16>, vector<8x288xf32> -> vector<8x288xf32>
    %13 = vector.extract_strided_slice %0 {offsets = [1, 0], sizes = [1, 288], strides = [1, 1]} : vector<4x384xf32> to vector<1x288xf32>
    %14 = vector.broadcast %13 : vector<1x288xf32> to vector<8x288xf32>
    %15 = arith.addf %12, %14 : vector<8x288xf32>
    %cst_9 = arith.constant 0.000000e+00 : f32
    %16 = vector.broadcast %cst_9 : f32 to vector<8x288xf32>
    %17 = arith.maximumf %15, %16 : vector<8x288xf32>
    %18 = arith.truncf %17 : vector<8x288xf32> to vector<8x288xbf16>
    %c0_10 = arith.constant 0 : index
    %c0_11 = arith.constant 0 : index
    %19 = vector.load %arg4[%c0_10, %c0_11] : memref<288x128xbf16, #tpu.memory_space<vmem>>, vector<288x128xbf16>
    %cst_12 = arith.constant dense<0.000000e+00> : vector<8x128xf32>
    %20 = tpu.matmul %18, %19, %cst_12 {dimension_numbers = #tpu.dot_dimension_numbers<[1], [0], [0], [1], [0, 0, 1, 1], [], []>} : vector<8x288xbf16>, vector<288x128xbf16>, vector<8x128xf32> -> vector<8x128xf32>
    %21 = vector.extract_strided_slice %0 {offsets = [2, 0], sizes = [1, 128], strides = [1, 1]} : vector<4x384xf32> to vector<1x128xf32>
    %22 = vector.broadcast %21 : vector<1x128xf32> to vector<8x128xf32>
    %23 = arith.addf %20, %22 : vector<8x128xf32>
    %cst_13 = arith.constant 0.000000e+00 : f32
    %24 = vector.broadcast %cst_13 : f32 to vector<8x128xf32>
    %25 = arith.maximumf %23, %24 : vector<8x128xf32>
    %26 = arith.truncf %25 : vector<8x128xf32> to vector<8x128xbf16>
    %c0_14 = arith.constant 0 : index
    %c0_15 = arith.constant 0 : index
    %27 = vector.load %arg5[%c0_14, %c0_15] : memref<128x256xbf16, #tpu.memory_space<vmem>>, vector<128x256xbf16>
    %cst_16 = arith.constant dense<0.000000e+00> : vector<8x256xf32>
    %28 = tpu.matmul %26, %27, %cst_16 {dimension_numbers = #tpu.dot_dimension_numbers<[1], [0], [0], [1], [0, 0, 1, 1], [], []>} : vector<8x128xbf16>, vector<128x256xbf16>, vector<8x256xf32> -> vector<8x256xf32>
    %29 = vector.extract_strided_slice %0 {offsets = [3, 0], sizes = [1, 256], strides = [1, 1]} : vector<4x384xf32> to vector<1x256xf32>
    %30 = vector.broadcast %29 : vector<1x256xf32> to vector<8x256xf32>
    %31 = arith.addf %28, %30 : vector<8x256xf32>
    %c0_17 = arith.constant 0 : index
    %c0_18 = arith.constant 0 : index
    %32 = vector.load %arg7[%c0_17, %c0_18] : memref<8x256xf32, #tpu.memory_space<vmem>>, vector<8x256xf32>
    tpu.vector_store %arg7[%c0_17, %c0_18], %31 {strides = array<i32>} : memref<8x256xf32, #tpu.memory_space<vmem>>, vector<8x256xf32>,
    return
  }
  func.func @transform_0(%arg0: i32) -> (i32, i32) {
    %c0_i32 = arith.constant 0 : i32
    %c0_i32_0 = arith.constant 0 : i32
    return %arg0, %c0_i32 : i32, i32
  }
  func.func @transform_1(%arg0: i32) -> (i32, i32) {
    %c0_i32 = arith.constant 0 : i32
    %c0_i32_0 = arith.constant 0 : i32
    %c0_i32_1 = arith.constant 0 : i32
    return %c0_i32, %c0_i32_0 : i32, i32
  }
  func.func @transform_2(%arg0: i32) -> (i32, i32) {
    %c0_i32 = arith.constant 0 : i32
    %c0_i32_0 = arith.constant 0 : i32
    %c0_i32_1 = arith.constant 0 : i32
    return %c0_i32, %c0_i32_0 : i32, i32
  }
  func.func @transform_3(%arg0: i32) -> (i32, i32) {
    %c0_i32 = arith.constant 0 : i32
    %c0_i32_0 = arith.constant 0 : i32
    %c0_i32_1 = arith.constant 0 : i32
    return %c0_i32, %c0_i32_0 : i32, i32
  }
  func.func @transform_4(%arg0: i32) -> (i32, i32) {
    %c0_i32 = arith.constant 0 : i32
    %c0_i32_0 = arith.constant 0 : i32
    %c0_i32_1 = arith.constant 0 : i32
    return %c0_i32, %c0_i32_0 : i32, i32
  }
  func.func @transform_5(%arg0: i32) -> (i32, i32) {
    %c0_i32 = arith.constant 0 : i32
    %c0_i32_0 = arith.constant 0 : i32
    %c0_i32_1 = arith.constant 0 : i32
    return %c0_i32, %c0_i32_0 : i32, i32
  }
  func.func @transform_6(%arg0: i32) -> (i32, i32) {
    %c0_i32 = arith.constant 0 : i32
    %c0_i32_0 = arith.constant 0 : i32
    return %arg0, %c0_i32 : i32, i32
  }
}

</mosaic_0001>

<bundles_post_ra>
// kernel: qnetwork_forward.1
= control target key start
LH: loop header
LB: loop body
LE: loop exit
PB: predicated region body
PF: predicated region fallthrough
CT: control target
= control target key end

     0   :  { %11 = vsyncpa [#allocation3], 0  ;;  %s6405_s0 = inlined_call_operand.vmem [shape: f32[16,2700], index: 0, kind: input, shape index: {}]   ;;  %s6406_s1 = inlined_call_operand.vmem [shape: bf16[2700,256], index: 1, kind: input, shape index: {}]   ;;  %s6407_s2 = inlined_call_operand.vmem [shape: bf16[256,288], index: 2, kind: input, shape index: {}]   ;;  %s6408_s3 = inlined_call_operand.vmem [shape: bf16[288,128], index: 3, kind: input, shape index: {}]   ;;  %s6409_s4 = inlined_call_operand.vmem [shape: bf16[128,256], index: 4, kind: input, shape index: {}]   ;;  %s6410_s5 = inlined_call_operand.vmem [shape: f32[4,384], index: 5, kind: input, shape index: {}]   ;;  %s6411_s6 = inlined_call_operand.hbm [shape: f32[16,256], index: 6, kind: output, shape index: {}]  }
   0x1   :  { %13 = vsyncpa [#allocation3 + $0x1], 0  ;;  %s4997_s21 = smov 0   ;;  %s4999_s22 = smov 0  }
   0x2   :  { %s5001_s23 = smov 0   ;;  %s5003_s24 = smov 0  }
   0x3 LB: > { %s5018_s25 = sadd.s32 4294967295, %s4956_s24   ;;  %s3708_s26 = sadd.s32 4294967294, %s4956_s24   ;;  %s4956_s24 = sphi %s5003_s24, %s6417_s24   ;;  %s4952_s23 = sphi %s5001_s23, %s6416_s23   ;;  %s4948_s22 = sphi %s4999_s22, %s6415_s22   ;;  %s4944_s21 = sphi %s4997_s21, %s6414_s21  }
   0x4   : > { %s5022_s27 = sadd.s32 1, %s4956_s24   ;;  %s157_s28 = sadd.s32 1, %s4952_s23 }
   0x5   : > { %s154_s29 = ssub.s32 %s4956_s24, %s5022_s27  ;;  %p167_p0 = scmp.ne.s32.totalorder %s4952_s23, %s4948_s22 }
   0x6   : > { %p155_p1 = scmp.eq.s32.totalorder %s154_s29, 0  ;;  %p168_p2 = scmp.eq.s32.totalorder %s5018_s25, 1 }
   0x7   : > { %p173_p3 = scmp.ne.s32.totalorder %s4948_s22, %s4944_s21  ;;  %p174_p4 = scmp.eq.s32.totalorder %s3708_s26, 1 }
   0x8   : > { %s5033_s30 = scalar_select %p155_p1, %s4952_s23, %s157_s28  }
   0x9   : > { %p5035_p5 = por %p168_p2, %p167_p0  ;;  %p5039_p6 = por %p174_p4, %p173_p3 }
   0xa   : > { %p3711_p7 = scmp.ge.s32.totalorder %s4956_s24, 1  ;;  %p215_p8 = scmp.lt.s32.totalorder %s4956_s24, 3 }
   0xc   : > { %p216_p9 = pnand %p3711_p7, %p215_p8 }
   0xd   : > { %v4281_v0 = vld [vmem:[%s6406_s1 + $0x4] ss:$8 sps:$4 sm:$0xff] (!%p216_p9)   ;;  %v4285_v2 = vld [vmem:[%s6406_s1] ss:$8 sps:$4 sm:$0xff] (!%p216_p9)   ;;  %v4287_v4 = vld [vmem:[%s6406_s1 + $0x14] ss:$8 sps:$4 sm:$0xff] (!%p216_p9)  }
   0xe   : > { %219 = sbr.rel (%p216_p9) target bundleno = 1355 (0x54b), region = 44  ;;  %v4283_v1 = vld [vmem:[%s6406_s1 + $0x404] ss:$8 sps:$4 sm:$0xff] (!%p216_p9)   ;;  %2353 = vmatprep.subr.bf16.mxu1 (!%p216_p9), %v4281_v0  ;;  %v4286_v3 = vld [vmem:[%s6406_s1 + $0x400] ss:$8 sps:$4 sm:$0xff] (!%p216_p9)   ;;  %p245_p10 = scmp.lt.s32.totalorder (!%p216_p9), %s5018_s25, 1 }
   0xf   : > { %2517 = vmatprep.subr.bf16.mxu0 (!%p216_p9), %v4283_v1  ;;  %2354 = vmatpush1.bf16.msra.mxu1 (!%p216_p9), %v4285_v2  ;;  %v4289_v5 = vld [vmem:[%s6406_s1 + $0x414] ss:$8 sps:$4 sm:$0xff] (!%p216_p9)   ;;  %v4291_v6 = vld [vmem:[%s6406_s1 + $0x10] ss:$8 sps:$4 sm:$0xff] (!%p216_p9)   ;;  %v4293_v8 = vld [vmem:[%s6406_s1 + $0x24] ss:$8 sps:$4 sm:$0xff] (!%p216_p9)  }
  0x10   : > { %2518 = vmatpush1.bf16.msra.mxu0 (!%p216_p9), %v4286_v3  ;;  %2355 = vmatprep.subr.bf16.mxu1 (!%p216_p9), %v4287_v4  ;;  %v4292_v7 = vld [vmem:[%s6406_s1 + $0x410] ss:$8 sps:$4 sm:$0xff] (!%p216_p9)   ;;  %v4295_v9 = vld [vmem:[%s6406_s1 + $0x424] ss:$8 sps:$4 sm:$0xff] (!%p216_p9)   ;;  %v4297_v10 = vld [vmem:[%s6406_s1 + $0x20] ss:$8 sps:$4 sm:$0xff] (!%p216_p9)  }
  0x11   : > { %2519 = vmatprep.subr.bf16.mxu0 (!%p216_p9), %v4289_v5  ;;  %v4298_v11 = vld [vmem:[%s6406_s1 + $0x420] ss:$8 sps:$4 sm:$0xff] (!%p216_p9)   ;;  %v4299_v12 = vld [vmem:[%s6406_s1 + $0x34] ss:$8 sps:$4 sm:$0xff] (!%p216_p9)   ;;  %v4303_v14 = vld [vmem:[%s6406_s1 + $0x30] ss:$8 sps:$4 sm:$0xff] (!%p216_p9)  }
  0x12   : > { %v4301_v13 = vld [vmem:[%s6406_s1 + $0x434] ss:$8 sps:$4 sm:$0xff] (!%p216_p9)   ;;  %v4304_v15 = vld [vmem:[%s6406_s1 + $0x430] ss:$8 sps:$4 sm:$0xff] (!%p216_p9)   ;;  %v4305_v16 = vld [vmem:[%s6406_s1 + $0x44] ss:$8 sps:$4 sm:$0xff] (!%p216_p9)  }
  0x13   : > { %2356 = vmatpush1.bf16.msra.mxu1 (!%p216_p9), %v4291_v6  ;;  %v4307_v17 = vld [vmem:[%s6406_s1 + $0x444] ss:$8 sps:$4 sm:$0xff] (!%p216_p9)   ;;  %v4309_v18 = vld [vmem:[%s6406_s1 + $0x40] ss:$8 sps:$4 sm:$0xff] (!%p216_p9)   ;;  %v4311_v20 = vld [vmem:[%s6406_s1 + $0x54] ss:$8 sps:$4 sm:$0xff] (!%p216_p9)  }
  0x14   : > { %2520 = vmatpush1.bf16.msra.mxu0 (!%p216_p9), %v4292_v7  ;;  %2357 = vmatprep.subr.bf16.mxu1 (!%p216_p9), %v4293_v8  ;;  %v4310_v19 = vld [vmem:[%s6406_s1 + $0x440] ss:$8 sps:$4 sm:$0xff] (!%p216_p9)   ;;  %v4313_v21 = vld [vmem:[%s6406_s1 + $0x454] ss:$8 sps:$4 sm:$0xff] (!%p216_p9)   ;;  %v4315_v22 = vld [vmem:[%s6406_s1 + $0x50] ss:$8 sps:$4 sm:$0xff] (!%p216_p9)  }
  0x15   : > { %2521 = vmatprep.subr.bf16.mxu0 %v4295_v9  ;;  %v4316_v23 = vld [vmem:[%s6406_s1 + $0x450] ss:$8 sps:$4 sm:$0xff]   ;;  %v4317_v24 = vld [vmem:[%s6406_s1 + $0x64] ss:$8 sps:$4 sm:$0xff]   ;;  %v4321_v26 = vld [vmem:[%s6406_s1 + $0x60] ss:$8 sps:$4 sm:$0xff]  }
  0x16   : > { %v4319_v25 = vld [vmem:[%s6406_s1 + $0x464] ss:$8 sps:$4 sm:$0xff]   ;;  %v4322_v27 = vld [vmem:[%s6406_s1 + $0x460] ss:$8 sps:$4 sm:$0xff]   ;;  %v4323_v28 = vld [vmem:[%s6406_s1 + $0x74] ss:$8 sps:$4 sm:$0xff]  }
  0x17   : > { %2358 = vmatpush1.bf16.msra.mxu1 %v4297_v10  ;;  %v4325_v29 = vld [vmem:[%s6406_s1 + $0x474] ss:$8 sps:$4 sm:$0xff]   ;;  %v4327_v30 = vld [vmem:[%s6406_s1 + $0x70] ss:$8 sps:$4 sm:$0xff]   ;;  %v4329_v32 = vld [vmem:[%s6406_s1 + $0x84] ss:$8 sps:$4 sm:$0xff]  }
  0x18   : > { %2522 = vmatpush1.bf16.msra.mxu0 %v4298_v11  ;;  %2359 = vmatprep.subr.bf16.mxu1 %v4299_v12  ;;  %v4328_v31 = vld [vmem:[%s6406_s1 + $0x470] ss:$8 sps:$4 sm:$0xff]   ;;  %v4331_v33 = vld [vmem:[%s6406_s1 + $0x484] ss:$8 sps:$4 sm:$0xff]   ;;  %v4333_v34 = vld [vmem:[%s6406_s1 + $0x80] ss:$8 sps:$4 sm:$0xff]  }
  0x19   : > { %2523 = vmatprep.subr.bf16.mxu0 %v4301_v13  ;;  %v4334_v35 = vld [vmem:[%s6406_s1 + $0x480] ss:$8 sps:$4 sm:$0xff]   ;;  %s246_s26 = scalar_select %p245_p10, %s5018_s25, 1  ;;  %v4335_v36 = vld [vmem:[%s6406_s1 + $0x94] ss:$8 sps:$4 sm:$0xff]   ;;  %vm2342_vm0 = vcmask 97280  }
  0x1a   : > { %v4337_v37 = vld [vmem:[%s6406_s1 + $0x494] ss:$8 sps:$4 sm:$0xff]   ;;  %v4339_v38 = vld [vmem:[%s6406_s1 + $0x90] ss:$8 sps:$4 sm:$0xff]   ;;  %v4341_v40 = vld [vmem:[%s6406_s1 + $0xa4] ss:$8 sps:$4 sm:$0xff]  }
  0x1b   : > { %2360 = vmatpush1.bf16.msra.mxu1 %v4303_v14  ;;  %s4238_s13 = smul.u32 176, %s246_s26  ;;  %v4340_v39 = vld [vmem:[%s6406_s1 + $0x490] ss:$8 sps:$4 sm:$0xff]   ;;  %v4343_v41 = vld [vmem:[%s6406_s1 + $0x4a4] ss:$8 sps:$4 sm:$0xff]   ;;  %vm2346_vm1 = vcmask 1045504  }
  0x1c   : > { %2524 = vmatpush1.bf16.msra.mxu0 %v4304_v15  ;;  %2361 = vmatprep.subr.bf16.mxu1 %v4305_v16  ;;  %v4345_v42 = vld [vmem:[%s6406_s1 + $0xa0] ss:$8 sps:$4 sm:$0xff]   ;;  %v4347_v44 = vld [vmem:[%s6406_s1 + $0xb4] ss:$8 sps:$4 sm:$0xff]   ;;  %v4351_v47 = vld [vmem:[%s6406_s1 + $0xb0] ss:$8 sps:$4 sm:$0xff]  }
  0x1d   : > { %2525 = vmatprep.subr.bf16.mxu0 %v4307_v17  ;;  %v4346_v43 = vld [vmem:[%s6406_s1 + $0x4a0] ss:$8 sps:$4 sm:$0xff]   ;;  %s5182_s11 = scalar_lea.vmem %s6405_s0, %s4238_s13  ;;  %v4349_v45 = vld [vmem:[%s6406_s1 + $0x4b4] ss:$8 sps:$4 sm:$0xff]   ;;  %v4352_v49 = vld [vmem:[%s6406_s1 + $0x4b0] ss:$8 sps:$4 sm:$0xff]  }
  0x1e   : > { %v254_v46 = vld [vmem:[%s5182_s11 + $0x8] sm:$0xff]  ;;  %v4359_v56 = vld [vmem:[%s6406_s1 + $0xd4] ss:$8 sps:$4 sm:$0xff]   ;;  %v4363_v58 = vld [vmem:[%s6406_s1 + $0xd0] ss:$8 sps:$4 sm:$0xff]   ;;  %vm4959_vm2 = vmmov 0  }
  0x1f   : > { %2362 = vmatpush1.bf16.msra.mxu1 %v4309_v18  ;;  %v276_v48 = vpack.c.bf16 %v254_v46, %v254_v46  ;;  %v262_v50 = vld [vmem:[%s5182_s11 + $0x48] sm:$0xff]  ;;  %v4361_v57 = vld [vmem:[%s6406_s1 + $0x4d4] ss:$8 sps:$4 sm:$0xff]   ;;  %v4364_v59 = vld [vmem:[%s6406_s1 + $0x4d0] ss:$8 sps:$4 sm:$0xff]   ;;  %vm3391_vm3 = vcmask 261120  }
  0x20   : > { %2526 = vmatpush1.bf16.msra.mxu0 %v4310_v19  ;;  %2363 = vmatprep.subr.bf16.mxu1 %v4311_v20  ;;  %v4353_v51 = vld [vmem:[%s6406_s1 + $0xc4] ss:$8 sps:$4 sm:$0xff]   ;;  %v284_v53 = vpack.c.bf16 %v262_v50, %v262_v50  ;;  %v4357_v54 = vld [vmem:[%s6406_s1 + $0xc0] ss:$8 sps:$4 sm:$0xff]   ;;  %v4371_v0 = vld [vmem:[%s6406_s1 + $0xf4] ss:$8 sps:$4 sm:$0xff]  }
  0x21   : > { %2527 = vmatprep.subr.bf16.mxu0 %v4313_v21  ;;  %v4355_v52 = vld [vmem:[%s6406_s1 + $0x4c4] ss:$8 sps:$4 sm:$0xff]   ;;  %2385 = vmatprep.mubr.bf16.mxu1 %v276_v48  ;;  %v4358_v55 = vld [vmem:[%s6406_s1 + $0x4c0] ss:$8 sps:$4 sm:$0xff]   ;;  %v4373_v1 = vld [vmem:[%s6406_s1 + $0x4f4] ss:$8 sps:$4 sm:$0xff]  }
  0x22   : > { %2549 = vmatprep.mubr.bf16.mxu0 %v284_v53  ;;  %v4365_v60 = vld [vmem:[%s6406_s1 + $0xe4] ss:$8 sps:$4 sm:$0xff]   ;;  %v4369_v62 = vld [vmem:[%s6406_s1 + $0xe0] ss:$8 sps:$4 sm:$0xff]   ;;  %v4375_v2 = vld [vmem:[%s6406_s1 + $0xf0] ss:$8 sps:$4 sm:$0xff]  }
  0x23   : > { %2364 = vmatpush1.bf16.msra.mxu1 %v4315_v22  ;;  %v4367_v61 = vld [vmem:[%s6406_s1 + $0x4e4] ss:$8 sps:$4 sm:$0xff]   ;;  %v4370_v63 = vld [vmem:[%s6406_s1 + $0x4e0] ss:$8 sps:$4 sm:$0xff]   ;;  %v4376_v3 = vld [vmem:[%s6406_s1 + $0x4f0] ss:$8 sps:$4 sm:$0xff]  }
  0x24   : > { %2528 = vmatpush1.bf16.msra.mxu0 %v4316_v23  ;;  %2365 = vmatprep.subr.bf16.mxu1 %v4317_v24  ;;  %v4379_v4 = vld [vmem:[%s6406_s1 + $0x104] ss:$8 sps:$4 sm:$0xff]   ;;  %v4377_v8 = vld [vmem:[%s6406_s1 + $0x100] ss:$8 sps:$4 sm:$0xff]   ;;  %v4385_v12 = vld [vmem:[%s6406_s1 + $0x114] ss:$8 sps:$4 sm:$0xff]  }
  0x25   : > { %2529 = vmatprep.subr.bf16.mxu0 %v4319_v25  ;;  %v253_v5 = vld [vmem:[%s5182_s11] sm:$0xff]  ;;  %v4388_v13 = vld [vmem:[%s6406_s1 + $0x514] ss:$8 sps:$4 sm:$0xff]   ;;  %v4383_v14 = vld [vmem:[%s6406_s1 + $0x110] ss:$8 sps:$4 sm:$0xff]   ;;  %s242_s13 = sand.u32 1, %s4948_s22  }
  0x26   : > { %v261_v6 = vld [vmem:[%s5182_s11 + $0x40] sm:$0xff]  ;;  %v275_v10 = vpack.c.bf16 %v253_v5, %v253_v5  ;;  %v4386_v15 = vld [vmem:[%s6406_s1 + $0x510] ss:$8 sps:$4 sm:$0xff]   ;;  %v4397_v20 = vld [vmem:[%s6406_s1 + $0x134] ss:$8 sps:$4 sm:$0xff]   ;;  %s3712_s19 = sshll.u32 %s242_s13, 4 }
  0x27   : > { %2366 = vmatpush1.bf16.msra.mxu1 %v4321_v26  ;;  %v4382_v7 = vld [vmem:[%s6406_s1 + $0x504] ss:$8 sps:$4 sm:$0xff]   ;;  %v4380_v9 = vld [vmem:[%s6406_s1 + $0x500] ss:$8 sps:$4 sm:$0xff]   ;;  %v283_v11 = vpack.c.bf16 %v261_v6, %v261_v6  ;;  %v4400_v21 = vld [vmem:[%s6406_s1 + $0x534] ss:$8 sps:$4 sm:$0xff]  }
  0x28   : > { %2530 = vmatpush1.bf16.msra.mxu0 %v4322_v27  ;;  %2367 = vmatprep.subr.bf16.mxu1 %v4323_v28  ;;  %v4391_v16 = vld [vmem:[%s6406_s1 + $0x124] ss:$8 sps:$4 sm:$0xff]   ;;  %v4389_v18 = vld [vmem:[%s6406_s1 + $0x120] ss:$8 sps:$4 sm:$0xff]   ;;  %v4395_v22 = vld [vmem:[%s6406_s1 + $0x130] ss:$8 sps:$4 sm:$0xff]  }
  0x29   : > { %2531 = vmatprep.subr.bf16.mxu0 %v4325_v29  ;;  %v4394_v17 = vld [vmem:[%s6406_s1 + $0x524] ss:$8 sps:$4 sm:$0xff]   ;;  %v4392_v19 = vld [vmem:[%s6406_s1 + $0x520] ss:$8 sps:$4 sm:$0xff]   ;;  %v4398_v23 = vld [vmem:[%s6406_s1 + $0x530] ss:$8 sps:$4 sm:$0xff]  }
  0x2a   : > { %v4403_v24 = vld [vmem:[%s6406_s1 + $0x144] ss:$8 sps:$4 sm:$0xff]   ;;  %v4401_v26 = vld [vmem:[%s6406_s1 + $0x140] ss:$8 sps:$4 sm:$0xff]   ;;  %v4409_v28 = vld [vmem:[%s6406_s1 + $0x154] ss:$8 sps:$4 sm:$0xff]  }
  0x2b   : > { %2368 = vmatpush1.bf16.msra.mxu1 %v4327_v30  ;;  %v4406_v25 = vld [vmem:[%s6406_s1 + $0x544] ss:$8 sps:$4 sm:$0xff]   ;;  %v4404_v27 = vld [vmem:[%s6406_s1 + $0x540] ss:$8 sps:$4 sm:$0xff]   ;;  %v4412_v29 = vld [vmem:[%s6406_s1 + $0x554] ss:$8 sps:$4 sm:$0xff]  }
  0x2c   : > { %2532 = vmatpush1.bf16.msra.mxu0 %v4328_v31  ;;  %2369 = vmatprep.subr.bf16.mxu1 %v4329_v32  ;;  %v4407_v30 = vld [vmem:[%s6406_s1 + $0x150] ss:$8 sps:$4 sm:$0xff]   ;;  %v4415_v32 = vld [vmem:[%s6406_s1 + $0x164] ss:$8 sps:$4 sm:$0xff]   ;;  %v4425_v46 = vld [vmem:[%s6406_s1 + $0x180] ss:$8 sps:$4 sm:$0xff]  }
  0x2d   : > { %2533 = vmatprep.subr.bf16.mxu0 %v4331_v33  ;;  %v4410_v31 = vld [vmem:[%s6406_s1 + $0x550] ss:$8 sps:$4 sm:$0xff]   ;;  %v4418_v33 = vld [vmem:[%s6406_s1 + $0x564] ss:$8 sps:$4 sm:$0xff]   ;;  %v4433_v48 = vld [vmem:[%s6406_s1 + $0x194] ss:$8 sps:$4 sm:$0xff]  }
  0x2e   : > { %v4431_v50 = vld [vmem:[%s6406_s1 + $0x190] ss:$8 sps:$4 sm:$0xff]   ;;  %v4442_v53 = vld [vmem:[%s6406_s1 + $0x5a4] ss:$8 sps:$4 sm:$0xff]   ;;  %v4461_v6 = vld [vmem:[%s6406_s1 + $0x1e0] ss:$8 sps:$4 sm:$0xff]  }
  0x2f   : > { %2370 = vmatpush1.bf16.msra.mxu1 %v4333_v34  ;;  %v256_v34 = vld [vmem:[%s5182_s11 + $0x18] sm:$0xff]  ;;  %v4466_v5 = vld [vmem:[%s6406_s1 + $0x5e4] ss:$8 sps:$4 sm:$0xff]   ;;  %s4142_s20 = sshll.u32 %s5018_s25, 8  ;;  %s244_s28 = scalar_lea.vmem [#allocation2], %s3712_s19 }
  0x30   : > { %2534 = vmatpush1.bf16.msra.mxu0 %v4334_v35  ;;  %2371 = vmatprep.subr.bf16.mxu1 %v4335_v36  ;;  %v4413_v35 = vld [vmem:[%s6406_s1 + $0x160] ss:$8 sps:$4 sm:$0xff]   ;;  %v278_v36 = vpack.c.bf16 %v256_v34, %v256_v34  ;;  %v4491_v34 = vld [vmem:[%s6406_s1 + $0x230] ss:$8 sps:$4 sm:$0xff]   ;;  %s3649_s26 = sshll.u32 %s244_s28, 4  ;;  %s6363_s10 = scalar_lea.hbm %s6411_s6, %s4142_s20  ;;  %s6365_s26 = int_to_ptr.vmem [resolvable:$true] %s3649_s26 }
  0x31   : > { %2535 = vmatprep.subr.bf16.mxu0 %v4337_v37  ;;  %v4416_v37 = vld [vmem:[%s6406_s1 + $0x560] ss:$8 sps:$4 sm:$0xff]   ;;  %s3635_s25 = scalar_lea.sflag [#allocation3], %s242_s13  ;;  %s4894_s12 = scalar_lea.vmem %s6365_s26, 256 }
  0x32   : > { %p4895_p11 = scmp.ne.s32.totalorder %s6365_s26, %s4894_s12  ;;  %s4961_s14 = smov [#allocation2]  }
  0x33   : > { %2372 = vmatpush1.bf16.msra.mxu1 %v4339_v38  ;;  %v264_v38 = vld [vmem:[%s5182_s11 + $0x58] sm:$0xff]  ;;  %s4898_s15 = sshll.u32 %s4961_s14, 4  ;;  %s4899_s15 = int_to_ptr.vmem [resolvable:$false] %s4898_s15 }
  0x34   : > { %2536 = vmatpush1.bf16.msra.mxu0 %v4340_v39  ;;  %2373 = vmatprep.subr.bf16.mxu1 %v4341_v40  ;;  %v4421_v39 = vld [vmem:[%s6406_s1 + $0x174] ss:$8 sps:$4 sm:$0xff]   ;;  %p4896_p12 = pnand %p4895_p11, %p5035_p5  ;;  %s4900_s16 = scalar_lea.vmem %s4899_s15, 512 }
  0x35   : > { %2537 = vmatprep.subr.bf16.mxu0 %v4343_v41  ;;  %v4424_v40 = vld [vmem:[%s6406_s1 + $0x574] ss:$8 sps:$4 sm:$0xff]   ;;  %v286_v41 = vpack.c.bf16 %v264_v38, %v264_v38  ;;  %v4497_v38 = vld [vmem:[%s6406_s1 + $0x240] ss:$8 sps:$4 sm:$0xff]   ;;  %p4901_p0 = scmp.lt.s32.totalorder %s6365_s26, %s4899_s15  ;;  %p4902_p1 = scmp.lt.s32.totalorder %s4900_s16, %s4894_s12 }
  0x36   : > { %p4897_p13 = pneg %p4896_p12 }
  0x37   : > { %2374 = vmatpush1.bf16.msra.mxu1 %v4345_v42  ;;  %v4419_v42 = vld [vmem:[%s6406_s1 + $0x170] ss:$8 sps:$4 sm:$0xff]   ;;  %p4903_p2 = por %p4902_p1, %p4901_p0 }
  0x38   : > { %2538 = vmatpush1.bf16.msra.mxu0 %v4346_v43  ;;  %2375 = vmatprep.subr.bf16.mxu1 %v4347_v44  ;;  %v4422_v43 = vld [vmem:[%s6406_s1 + $0x570] ss:$8 sps:$4 sm:$0xff]   ;;  %v4427_v44 = vld [vmem:[%s6406_s1 + $0x184] ss:$8 sps:$4 sm:$0xff]  }
  0x39   : > { %2539 = vmatprep.subr.bf16.mxu0 %v4349_v45  ;;  %v4430_v45 = vld [vmem:[%s6406_s1 + $0x584] ss:$8 sps:$4 sm:$0xff]   ;;  %p4904_p3 = pnand %p4903_p2, %p4897_p13 }
  0x3b   : > { %2376 = vmatpush1.bf16.msra.mxu1 %v4351_v47  ;;  %v4428_v47 = vld [vmem:[%s6406_s1 + $0x580] ss:$8 sps:$4 sm:$0xff]  }
  0x3c   : > { %2540 = vmatpush1.bf16.msra.mxu0 %v4352_v49  ;;  %2377 = vmatprep.subr.bf16.mxu1 %v4353_v51  ;;  %v4436_v49 = vld [vmem:[%s6406_s1 + $0x594] ss:$8 sps:$4 sm:$0xff]   ;;  %v4434_v51 = vld [vmem:[%s6406_s1 + $0x590] ss:$8 sps:$4 sm:$0xff]  }
  0x3d   : > { %2541 = vmatprep.subr.bf16.mxu0 %v4355_v52  ;;  %v4439_v52 = vld [vmem:[%s6406_s1 + $0x1a4] ss:$8 sps:$4 sm:$0xff]  }
  0x3f   : > { %2378 = vmatpush1.bf16.msra.mxu1 %v4357_v54  ;;  %v4437_v54 = vld [vmem:[%s6406_s1 + $0x1a0] ss:$8 sps:$4 sm:$0xff]  }
  0x40   : > { %2542 = vmatpush1.bf16.msra.mxu0 %v4358_v55  ;;  %2379 = vmatprep.subr.bf16.mxu1 %v4359_v56  ;;  %v4440_v55 = vld [vmem:[%s6406_s1 + $0x5a0] ss:$8 sps:$4 sm:$0xff]   ;;  %v4445_v56 = vld [vmem:[%s6406_s1 + $0x1b4] ss:$8 sps:$4 sm:$0xff]  }
  0x41   : > { %2543 = vmatprep.subr.bf16.mxu0 %v4361_v57  ;;  %v4448_v57 = vld [vmem:[%s6406_s1 + $0x5b4] ss:$8 sps:$4 sm:$0xff]  }
  0x43   : > { %2380 = vmatpush1.bf16.msra.mxu1 %v4363_v58  ;;  %v4443_v58 = vld [vmem:[%s6406_s1 + $0x1b0] ss:$8 sps:$4 sm:$0xff]  }
  0x44   : > { %2544 = vmatpush1.bf16.msra.mxu0 %v4364_v59  ;;  %2381 = vmatprep.subr.bf16.mxu1 %v4365_v60  ;;  %v4446_v59 = vld [vmem:[%s6406_s1 + $0x5b0] ss:$8 sps:$4 sm:$0xff]   ;;  %v4451_v60 = vld [vmem:[%s6406_s1 + $0x1c4] ss:$8 sps:$4 sm:$0xff]  }
  0x45   : > { %2545 = vmatprep.subr.bf16.mxu0 %v4367_v61  ;;  %v4454_v61 = vld [vmem:[%s6406_s1 + $0x5c4] ss:$8 sps:$4 sm:$0xff]  }
  0x47   : > { %2382 = vmatpush1.bf16.msra.mxu1 %v4369_v62  ;;  %v4449_v62 = vld [vmem:[%s6406_s1 + $0x1c0] ss:$8 sps:$4 sm:$0xff]  }
  0x48   : > { %2546 = vmatpush1.bf16.msra.mxu0 %v4370_v63  ;;  %2383 = vmatprep.subr.bf16.mxu1 %v4371_v0  ;;  %v4452_v63 = vld [vmem:[%s6406_s1 + $0x5c0] ss:$8 sps:$4 sm:$0xff]   ;;  %v4457_v0 = vld [vmem:[%s6406_s1 + $0x1d4] ss:$8 sps:$4 sm:$0xff]  }
  0x49   : > { %2547 = vmatprep.subr.bf16.mxu0 %v4373_v1  ;;  %v4460_v1 = vld [vmem:[%s6406_s1 + $0x5d4] ss:$8 sps:$4 sm:$0xff]  }
  0x4b   : > { %2384 = vmatpush1.bf16.msra.mxu1 %v4375_v2  ;;  %v4455_v2 = vld [vmem:[%s6406_s1 + $0x1d0] ss:$8 sps:$4 sm:$0xff]  }
  0x4c   : > { %2548 = vmatpush1.bf16.msra.mxu0 %v4376_v3  ;;  %2394 = vmatprep.subr.bf16.mxu1 %v4379_v4  ;;  %v4458_v3 = vld [vmem:[%s6406_s1 + $0x5d0] ss:$8 sps:$4 sm:$0xff]   ;;  %v4463_v4 = vld [vmem:[%s6406_s1 + $0x1e4] ss:$8 sps:$4 sm:$0xff]  }
  0x4d   : > { %2558 = vmatprep.subr.bf16.mxu0 %v4382_v7  ;;  %v4464_v7 = vld [vmem:[%s6406_s1 + $0x5e0] ss:$8 sps:$4 sm:$0xff]  }
  0x4e   : > { %2386 = vmatmul.mubr.bf16.vlgmr.msra.gmra.mrb[0].mxu1 %v275_v10  ;;  %v4467_v10 = vld [vmem:[%s6406_s1 + $0x1f0] ss:$8 sps:$4 sm:$0xff]  }
  0x4f   : > { %2550 = vmatmul.mubr.bf16.vlgmr.msra.gmra.mrb[0].mxu0 %v283_v11  ;;  %2395 = vmatpush1.bf16.msra.mxu1 %v4377_v8  ;;  %v4469_v8 = vld [vmem:[%s6406_s1 + $0x1f4] ss:$8 sps:$4 sm:$0xff]   ;;  %v4470_v11 = vld [vmem:[%s6406_s1 + $0x5f0] ss:$8 sps:$4 sm:$0xff]  }
  0x50   : > { %2559 = vmatpush1.bf16.msra.mxu0 %v4380_v9  ;;  %2396 = vmatprep.subr.bf16.mxu1 %v4385_v12  ;;  %v4472_v9 = vld [vmem:[%s6406_s1 + $0x5f4] ss:$8 sps:$4 sm:$0xff]   ;;  %v4475_v12 = vld [vmem:[%s6406_s1 + $0x204] ss:$8 sps:$4 sm:$0xff]  }
  0x51   : > { %2560 = vmatprep.subr.bf16.mxu0 %v4388_v13  ;;  %2426 = vmatprep.mubr.bf16.mxu1 %v278_v36  ;;  %v255_v13 = vld [vmem:[%s5182_s11 + $0x10] sm:$0xff]  ;;  %v4499_v36 = vld [vmem:[%s6406_s1 + $0x244] ss:$8 sps:$4 sm:$0xff]  }
  0x52   : > { %2590 = vmatprep.mubr.bf16.mxu0 %v286_v41  ;;  %v4508_v41 = vld [vmem:[%s6406_s1 + $0x654] ss:$8 sps:$4 sm:$0xff]  }
  0x53   : > { %2397 = vmatpush1.bf16.msra.mxu1 %v4383_v14  ;;  %v263_v14 = vld [vmem:[%s5182_s11 + $0x50] sm:$0xff] }
  0x54   : > { %2561 = vmatpush1.bf16.msra.mxu0 %v4386_v15  ;;  %2398 = vmatprep.subr.bf16.mxu1 %v4391_v16  ;;  %v4478_v15 = vld [vmem:[%s6406_s1 + $0x604] ss:$8 sps:$4 sm:$0xff]   ;;  %v4473_v16 = vld [vmem:[%s6406_s1 + $0x200] ss:$8 sps:$4 sm:$0xff]  }
  0x55   : > { %2562 = vmatprep.subr.bf16.mxu0 %v4394_v17  ;;  %v4476_v17 = vld [vmem:[%s6406_s1 + $0x600] ss:$8 sps:$4 sm:$0xff]  }
  0x57   : > { %2399 = vmatpush1.bf16.msra.mxu1 %v4389_v18  ;;  %v277_v18 = vpack.c.bf16 %v255_v13, %v255_v13  ;;  %v4562_v13 = vld [vmem:[%s6406_s1 + $0x6e4] ss:$8 sps:$4 sm:$0xff]  }
  0x58   : > { %2563 = vmatpush1.bf16.msra.mxu0 %v4392_v19  ;;  %2400 = vmatprep.subr.bf16.mxu1 %v4397_v20  ;;  %v285_v19 = vpack.c.bf16 %v263_v14, %v263_v14  ;;  %v4481_v20 = vld [vmem:[%s6406_s1 + $0x214] ss:$8 sps:$4 sm:$0xff]   ;;  %v4557_v14 = vld [vmem:[%s6406_s1 + $0x2e0] ss:$8 sps:$4 sm:$0xff]  }
  0x59   : > { %2564 = vmatprep.subr.bf16.mxu0 %v4400_v21  ;;  %v4484_v21 = vld [vmem:[%s6406_s1 + $0x614] ss:$8 sps:$4 sm:$0xff]  }
  0x5b   : > { %2401 = vmatpush1.bf16.msra.mxu1 %v4395_v22  ;;  %v258_v22 = vld [vmem:[%s5182_s11 + $0x28] sm:$0xff] }
  0x5c   : > { %2565 = vmatpush1.bf16.msra.mxu0 %v4398_v23  ;;  %2402 = vmatprep.subr.bf16.mxu1 %v4403_v24  ;;  %v4479_v23 = vld [vmem:[%s6406_s1 + $0x210] ss:$8 sps:$4 sm:$0xff]   ;;  %v280_v24 = vpack.c.bf16 %v258_v22, %v258_v22  ;;  %v265_v22 = vld [vmem:[%s5182_s11 + $0x60] sm:$0xff] }
  0x5d   : > { %2566 = vmatprep.subr.bf16.mxu0 %v4406_v25  ;;  %v4482_v25 = vld [vmem:[%s6406_s1 + $0x610] ss:$8 sps:$4 sm:$0xff]  }
  0x5f   : > { %2403 = vmatpush1.bf16.msra.mxu1 %v4401_v26  ;;  %v266_v26 = vld [vmem:[%s5182_s11 + $0x68] sm:$0xff] }
  0x60   : > { %2567 = vmatpush1.bf16.msra.mxu0 %v4404_v27  ;;  %2404 = vmatprep.subr.bf16.mxu1 %v4409_v28  ;;  %v4487_v27 = vld [vmem:[%s6406_s1 + $0x224] ss:$8 sps:$4 sm:$0xff]  }
  0x61   : > { %2568 = vmatprep.subr.bf16.mxu0 %v4412_v29  ;;  %v4490_v28 = vld [vmem:[%s6406_s1 + $0x624] ss:$8 sps:$4 sm:$0xff]   ;;  %v288_v29 = vpack.c.bf16 %v266_v26, %v266_v26 }
  0x63   : > { %2405 = vmatpush1.bf16.msra.mxu1 %v4407_v30  ;;  %v4485_v30 = vld [vmem:[%s6406_s1 + $0x220] ss:$8 sps:$4 sm:$0xff]  }
  0x64   : > { %2569 = vmatpush1.bf16.msra.mxu0 %v4410_v31  ;;  %2406 = vmatprep.subr.bf16.mxu1 %v4415_v32  ;;  %v4488_v31 = vld [vmem:[%s6406_s1 + $0x620] ss:$8 sps:$4 sm:$0xff]   ;;  %v4493_v32 = vld [vmem:[%s6406_s1 + $0x234] ss:$8 sps:$4 sm:$0xff]  }
  0x65   : > { %2570 = vmatprep.subr.bf16.mxu0 %v4418_v33  ;;  %v4496_v33 = vld [vmem:[%s6406_s1 + $0x634] ss:$8 sps:$4 sm:$0xff]  }
  0x67   : > { %2407 = vmatpush1.bf16.msra.mxu1 %v4413_v35  ;;  %v4494_v35 = vld [vmem:[%s6406_s1 + $0x630] ss:$8 sps:$4 sm:$0xff]  }
  0x68   : > { %2571 = vmatpush1.bf16.msra.mxu0 %v4416_v37  ;;  %2408 = vmatprep.subr.bf16.mxu1 %v4421_v39  ;;  %v4502_v37 = vld [vmem:[%s6406_s1 + $0x644] ss:$8 sps:$4 sm:$0xff]   ;;  %v4500_v39 = vld [vmem:[%s6406_s1 + $0x640] ss:$8 sps:$4 sm:$0xff]  }
  0x69   : > { %2572 = vmatprep.subr.bf16.mxu0 %v4424_v40  ;;  %v4505_v40 = vld [vmem:[%s6406_s1 + $0x254] ss:$8 sps:$4 sm:$0xff]  }
  0x6b   : > { %2409 = vmatpush1.bf16.msra.mxu1 %v4419_v42  ;;  %v4503_v42 = vld [vmem:[%s6406_s1 + $0x250] ss:$8 sps:$4 sm:$0xff]  }
  0x6c   : > { %2573 = vmatpush1.bf16.msra.mxu0 %v4422_v43  ;;  %2410 = vmatprep.subr.bf16.mxu1 %v4427_v44  ;;  %v4506_v43 = vld [vmem:[%s6406_s1 + $0x650] ss:$8 sps:$4 sm:$0xff]   ;;  %v4511_v44 = vld [vmem:[%s6406_s1 + $0x264] ss:$8 sps:$4 sm:$0xff]  }
  0x6d   : > { %2574 = vmatprep.subr.bf16.mxu0 %v4430_v45  ;;  %v4514_v45 = vld [vmem:[%s6406_s1 + $0x664] ss:$8 sps:$4 sm:$0xff]  }
  0x6f   : > { %2411 = vmatpush1.bf16.msra.mxu1 %v4425_v46  ;;  %v4509_v46 = vld [vmem:[%s6406_s1 + $0x260] ss:$8 sps:$4 sm:$0xff]  }
  0x70   : > { %2575 = vmatpush1.bf16.msra.mxu0 %v4428_v47  ;;  %2412 = vmatprep.subr.bf16.mxu1 %v4433_v48  ;;  %v4512_v47 = vld [vmem:[%s6406_s1 + $0x660] ss:$8 sps:$4 sm:$0xff]   ;;  %v4517_v48 = vld [vmem:[%s6406_s1 + $0x274] ss:$8 sps:$4 sm:$0xff]  }
  0x71   : > { %2576 = vmatprep.subr.bf16.mxu0 %v4436_v49  ;;  %v4520_v49 = vld [vmem:[%s6406_s1 + $0x674] ss:$8 sps:$4 sm:$0xff]  }
  0x73   : > { %2413 = vmatpush1.bf16.msra.mxu1 %v4431_v50  ;;  %v4515_v50 = vld [vmem:[%s6406_s1 + $0x270] ss:$8 sps:$4 sm:$0xff]  }
  0x74   : > { %2577 = vmatpush1.bf16.msra.mxu0 %v4434_v51  ;;  %2414 = vmatprep.subr.bf16.mxu1 %v4439_v52  ;;  %v4518_v51 = vld [vmem:[%s6406_s1 + $0x670] ss:$8 sps:$4 sm:$0xff]   ;;  %v4523_v52 = vld [vmem:[%s6406_s1 + $0x284] ss:$8 sps:$4 sm:$0xff]  }
  0x75   : > { %2578 = vmatprep.subr.bf16.mxu0 %v4442_v53  ;;  %v4526_v53 = vld [vmem:[%s6406_s1 + $0x684] ss:$8 sps:$4 sm:$0xff]  }
  0x77   : > { %2415 = vmatpush1.bf16.msra.mxu1 %v4437_v54  ;;  %v4521_v54 = vld [vmem:[%s6406_s1 + $0x280] ss:$8 sps:$4 sm:$0xff]  }
  0x78   : > { %2579 = vmatpush1.bf16.msra.mxu0 %v4440_v55  ;;  %2416 = vmatprep.subr.bf16.mxu1 %v4445_v56  ;;  %v4524_v55 = vld [vmem:[%s6406_s1 + $0x680] ss:$8 sps:$4 sm:$0xff]   ;;  %v4529_v56 = vld [vmem:[%s6406_s1 + $0x294] ss:$8 sps:$4 sm:$0xff]  }
  0x79   : > { %2580 = vmatprep.subr.bf16.mxu0 %v4448_v57  ;;  %v4532_v57 = vld [vmem:[%s6406_s1 + $0x694] ss:$8 sps:$4 sm:$0xff]  }
  0x7b   : > { %2417 = vmatpush1.bf16.msra.mxu1 %v4443_v58  ;;  %v4527_v58 = vld [vmem:[%s6406_s1 + $0x290] ss:$8 sps:$4 sm:$0xff]  }
  0x7c   : > { %2581 = vmatpush1.bf16.msra.mxu0 %v4446_v59  ;;  %2418 = vmatprep.subr.bf16.mxu1 %v4451_v60  ;;  %v4530_v59 = vld [vmem:[%s6406_s1 + $0x690] ss:$8 sps:$4 sm:$0xff]   ;;  %v4535_v60 = vld [vmem:[%s6406_s1 + $0x2a4] ss:$8 sps:$4 sm:$0xff]  }
  0x7d   : > { %2582 = vmatprep.subr.bf16.mxu0 %v4454_v61  ;;  %v4538_v61 = vld [vmem:[%s6406_s1 + $0x6a4] ss:$8 sps:$4 sm:$0xff]  }
  0x7f   : > { %2419 = vmatpush1.bf16.msra.mxu1 %v4449_v62  ;;  %v4533_v62 = vld [vmem:[%s6406_s1 + $0x2a0] ss:$8 sps:$4 sm:$0xff]  }
  0x80   : > { %2583 = vmatpush1.bf16.msra.mxu0 %v4452_v63  ;;  %2420 = vmatprep.subr.bf16.mxu1 %v4457_v0  ;;  %v4536_v63 = vld [vmem:[%s6406_s1 + $0x6a0] ss:$8 sps:$4 sm:$0xff]   ;;  %v4541_v0 = vld [vmem:[%s6406_s1 + $0x2b4] ss:$8 sps:$4 sm:$0xff]  }
  0x81   : > { %2584 = vmatprep.subr.bf16.mxu0 %v4460_v1  ;;  %v4544_v1 = vld [vmem:[%s6406_s1 + $0x6b4] ss:$8 sps:$4 sm:$0xff]  }
  0x83   : > { %2421 = vmatpush1.bf16.msra.mxu1 %v4455_v2  ;;  %v4539_v2 = vld [vmem:[%s6406_s1 + $0x2b0] ss:$8 sps:$4 sm:$0xff]  }
  0x84   : > { %2585 = vmatpush1.bf16.msra.mxu0 %v4458_v3  ;;  %2422 = vmatprep.subr.bf16.mxu1 %v4463_v4  ;;  %v4542_v3 = vld [vmem:[%s6406_s1 + $0x6b0] ss:$8 sps:$4 sm:$0xff]   ;;  %v4547_v4 = vld [vmem:[%s6406_s1 + $0x2c4] ss:$8 sps:$4 sm:$0xff]  }
  0x85   : > { %2586 = vmatprep.subr.bf16.mxu0 %v4466_v5  ;;  %v4550_v5 = vld [vmem:[%s6406_s1 + $0x6c4] ss:$8 sps:$4 sm:$0xff]  }
  0x87   : > { %2423 = vmatpush1.bf16.msra.mxu1 %v4461_v6  ;;  %v4545_v6 = vld [vmem:[%s6406_s1 + $0x2c0] ss:$8 sps:$4 sm:$0xff]  }
  0x88   : > { %2587 = vmatpush1.bf16.msra.mxu0 %v4464_v7  ;;  %2424 = vmatprep.subr.bf16.mxu1 %v4469_v8  ;;  %v4548_v7 = vld [vmem:[%s6406_s1 + $0x6c0] ss:$8 sps:$4 sm:$0xff]   ;;  %v4553_v8 = vld [vmem:[%s6406_s1 + $0x2d4] ss:$8 sps:$4 sm:$0xff]  }
  0x89   : > { %2588 = vmatprep.subr.bf16.mxu0 %v4472_v9  ;;  %v4556_v9 = vld [vmem:[%s6406_s1 + $0x6d4] ss:$8 sps:$4 sm:$0xff]  }
  0x8b   : > { %2425 = vmatpush1.bf16.msra.mxu1 %v4467_v10  ;;  %v4551_v10 = vld [vmem:[%s6406_s1 + $0x2d0] ss:$8 sps:$4 sm:$0xff]  }
  0x8c   : > { %2589 = vmatpush1.bf16.msra.mxu0 %v4470_v11  ;;  %2435 = vmatprep.subr.bf16.mxu1 %v4475_v12  ;;  %v4554_v11 = vld [vmem:[%s6406_s1 + $0x6d0] ss:$8 sps:$4 sm:$0xff]   ;;  %v4559_v12 = vld [vmem:[%s6406_s1 + $0x2e4] ss:$8 sps:$4 sm:$0xff]  }
  0x8d   : > { %2599 = vmatprep.subr.bf16.mxu0 %v4478_v15  ;;  %v4560_v15 = vld [vmem:[%s6406_s1 + $0x6e0] ss:$8 sps:$4 sm:$0xff]  }
  0x8e   : > { %2427 = vmatmul.mubr.bf16.vlgmr.msra.gmra.mrb[0].mxu1 %v277_v18  ;;  %v4563_v18 = vld [vmem:[%s6406_s1 + $0x2f0] ss:$8 sps:$4 sm:$0xff]  }
  0x8f   : > { %2591 = vmatmul.mubr.bf16.vlgmr.msra.gmra.mrb[0].mxu0 %v285_v19  ;;  %2436 = vmatpush1.bf16.msra.mxu1 %v4473_v16  ;;  %v4565_v16 = vld [vmem:[%s6406_s1 + $0x2f4] ss:$8 sps:$4 sm:$0xff]   ;;  %v4566_v19 = vld [vmem:[%s6406_s1 + $0x6f0] ss:$8 sps:$4 sm:$0xff]  }
  0x90   : > { %2600 = vmatpush1.bf16.msra.mxu0 %v4476_v17  ;;  %2437 = vmatprep.subr.bf16.mxu1 %v4481_v20  ;;  %v4568_v17 = vld [vmem:[%s6406_s1 + $0x6f4] ss:$8 sps:$4 sm:$0xff]   ;;  %v4571_v20 = vld [vmem:[%s6406_s1 + $0x304] ss:$8 sps:$4 sm:$0xff]  }
  0x91   : > { %2601 = vmatprep.subr.bf16.mxu0 %v4484_v21  ;;  %2467 = vmatprep.mubr.bf16.mxu1 %v280_v24  ;;  %v257_v21 = vld [vmem:[%s5182_s11 + $0x20] sm:$0xff] }
  0x92   : > { %2631 = vmatprep.mubr.bf16.mxu0 %v288_v29  ;;  %v4569_v24 = vld [vmem:[%s6406_s1 + $0x300] ss:$8 sps:$4 sm:$0xff]   ;;  %v279_v26 = vpack.c.bf16 %v257_v21, %v257_v21  ;;  %v268_v29 = vld [vmem:[%s5182_s11 + $0x78] sm:$0xff]  ;;  %v4658_v21 = vld [vmem:[%s6406_s1 + $0x7e4] ss:$8 sps:$4 sm:$0xff]  }
  0x93   : > { %2438 = vmatpush1.bf16.msra.mxu1 %v4479_v23  ;;  %v4574_v23 = vld [vmem:[%s6406_s1 + $0x704] ss:$8 sps:$4 sm:$0xff]  }
  0x94   : > { %2602 = vmatpush1.bf16.msra.mxu0 %v4482_v25  ;;  %2439 = vmatprep.subr.bf16.mxu1 %v4487_v27  ;;  %v4572_v25 = vld [vmem:[%s6406_s1 + $0x700] ss:$8 sps:$4 sm:$0xff]   ;;  %v287_v27 = vpack.c.bf16 %v265_v22, %v265_v22 }
  0x95   : > { %2603 = vmatprep.subr.bf16.mxu0 %v4490_v28  ;;  %v260_v28 = vld [vmem:[%s5182_s11 + $0x38] sm:$0xff]  ;;  %v4653_v22 = vld [vmem:[%s6406_s1 + $0x3e0] ss:$8 sps:$4 sm:$0xff]  }
  0x97   : > { %2440 = vmatpush1.bf16.msra.mxu1 %v4485_v30  ;;  %v4577_v30 = vld [vmem:[%s6406_s1 + $0x314] ss:$8 sps:$4 sm:$0xff]  }
  0x98   : > { %2604 = vmatpush1.bf16.msra.mxu0 %v4488_v31  ;;  %2441 = vmatprep.subr.bf16.mxu1 %v4493_v32  ;;  %v4580_v31 = vld [vmem:[%s6406_s1 + $0x714] ss:$8 sps:$4 sm:$0xff]   ;;  %v282_v32 = vpack.c.bf16 %v260_v28, %v260_v28 }
  0x99   : > { %2605 = vmatprep.subr.bf16.mxu0 %v4496_v33  ;;  %v290_v33 = vpack.c.bf16 %v268_v29, %v268_v29  ;;  %v259_v28 = vld [vmem:[%s5182_s11 + $0x30] sm:$0xff]  ;;  %v4667_v29 = vld [vmem:[%s6406_s1 + $0x804] ss:$8 sps:$4 sm:$0xff]  }
  0x9b   : > { %2442 = vmatpush1.bf16.msra.mxu1 %v4491_v34  ;;  %v4575_v34 = vld [vmem:[%s6406_s1 + $0x310] ss:$8 sps:$4 sm:$0xff]  }
  0x9c   : > { %2606 = vmatpush1.bf16.msra.mxu0 %v4494_v35  ;;  %2443 = vmatprep.subr.bf16.mxu1 %v4499_v36  ;;  %v4578_v35 = vld [vmem:[%s6406_s1 + $0x710] ss:$8 sps:$4 sm:$0xff]   ;;  %v4583_v36 = vld [vmem:[%s6406_s1 + $0x324] ss:$8 sps:$4 sm:$0xff]  }
  0x9d   : > { %2607 = vmatprep.subr.bf16.mxu0 %v4502_v37  ;;  %v4586_v37 = vld [vmem:[%s6406_s1 + $0x724] ss:$8 sps:$4 sm:$0xff]  }
  0x9f   : > { %2444 = vmatpush1.bf16.msra.mxu1 %v4497_v38  ;;  %v4581_v38 = vld [vmem:[%s6406_s1 + $0x320] ss:$8 sps:$4 sm:$0xff]  }
  0xa0   : > { %2608 = vmatpush1.bf16.msra.mxu0 %v4500_v39  ;;  %2445 = vmatprep.subr.bf16.mxu1 %v4505_v40  ;;  %v4584_v39 = vld [vmem:[%s6406_s1 + $0x720] ss:$8 sps:$4 sm:$0xff]   ;;  %v4589_v40 = vld [vmem:[%s6406_s1 + $0x334] ss:$8 sps:$4 sm:$0xff]  }
  0xa1   : > { %2609 = vmatprep.subr.bf16.mxu0 %v4508_v41  ;;  %v4592_v41 = vld [vmem:[%s6406_s1 + $0x734] ss:$8 sps:$4 sm:$0xff]  }
  0xa3   : > { %2446 = vmatpush1.bf16.msra.mxu1 %v4503_v42  ;;  %v4587_v42 = vld [vmem:[%s6406_s1 + $0x330] ss:$8 sps:$4 sm:$0xff]  }
  0xa4   : > { %2610 = vmatpush1.bf16.msra.mxu0 %v4506_v43  ;;  %2447 = vmatprep.subr.bf16.mxu1 %v4511_v44  ;;  %v4590_v43 = vld [vmem:[%s6406_s1 + $0x730] ss:$8 sps:$4 sm:$0xff]   ;;  %v4595_v44 = vld [vmem:[%s6406_s1 + $0x344] ss:$8 sps:$4 sm:$0xff]  }
  0xa5   : > { %2611 = vmatprep.subr.bf16.mxu0 %v4514_v45  ;;  %v4598_v45 = vld [vmem:[%s6406_s1 + $0x744] ss:$8 sps:$4 sm:$0xff]  }
  0xa7   : > { %2448 = vmatpush1.bf16.msra.mxu1 %v4509_v46  ;;  %v4593_v46 = vld [vmem:[%s6406_s1 + $0x340] ss:$8 sps:$4 sm:$0xff]  }
  0xa8   : > { %2612 = vmatpush1.bf16.msra.mxu0 %v4512_v47  ;;  %2449 = vmatprep.subr.bf16.mxu1 %v4517_v48  ;;  %v4596_v47 = vld [vmem:[%s6406_s1 + $0x740] ss:$8 sps:$4 sm:$0xff]   ;;  %v4601_v48 = vld [vmem:[%s6406_s1 + $0x354] ss:$8 sps:$4 sm:$0xff]  }
  0xa9   : > { %2613 = vmatprep.subr.bf16.mxu0 %v4520_v49  ;;  %v4604_v49 = vld [vmem:[%s6406_s1 + $0x754] ss:$8 sps:$4 sm:$0xff]  }
  0xab   : > { %2450 = vmatpush1.bf16.msra.mxu1 %v4515_v50  ;;  %v4599_v50 = vld [vmem:[%s6406_s1 + $0x350] ss:$8 sps:$4 sm:$0xff]  }
  0xac   : > { %2614 = vmatpush1.bf16.msra.mxu0 %v4518_v51  ;;  %2451 = vmatprep.subr.bf16.mxu1 %v4523_v52  ;;  %v4602_v51 = vld [vmem:[%s6406_s1 + $0x750] ss:$8 sps:$4 sm:$0xff]   ;;  %v4607_v52 = vld [vmem:[%s6406_s1 + $0x364] ss:$8 sps:$4 sm:$0xff]  }
  0xad   : > { %2615 = vmatprep.subr.bf16.mxu0 %v4526_v53  ;;  %v4610_v53 = vld [vmem:[%s6406_s1 + $0x764] ss:$8 sps:$4 sm:$0xff]  }
  0xaf   : > { %2452 = vmatpush1.bf16.msra.mxu1 %v4521_v54  ;;  %v4605_v54 = vld [vmem:[%s6406_s1 + $0x360] ss:$8 sps:$4 sm:$0xff]  }
  0xb0   : > { %2616 = vmatpush1.bf16.msra.mxu0 %v4524_v55  ;;  %2453 = vmatprep.subr.bf16.mxu1 %v4529_v56  ;;  %v4608_v55 = vld [vmem:[%s6406_s1 + $0x760] ss:$8 sps:$4 sm:$0xff]   ;;  %v4613_v56 = vld [vmem:[%s6406_s1 + $0x374] ss:$8 sps:$4 sm:$0xff]  }
  0xb1   : > { %2617 = vmatprep.subr.bf16.mxu0 %v4532_v57  ;;  %v4616_v57 = vld [vmem:[%s6406_s1 + $0x774] ss:$8 sps:$4 sm:$0xff]  }
  0xb3   : > { %2454 = vmatpush1.bf16.msra.mxu1 %v4527_v58  ;;  %v4611_v58 = vld [vmem:[%s6406_s1 + $0x370] ss:$8 sps:$4 sm:$0xff]  }
  0xb4   : > { %2618 = vmatpush1.bf16.msra.mxu0 %v4530_v59  ;;  %2455 = vmatprep.subr.bf16.mxu1 %v4535_v60  ;;  %v4614_v59 = vld [vmem:[%s6406_s1 + $0x770] ss:$8 sps:$4 sm:$0xff]   ;;  %v4619_v60 = vld [vmem:[%s6406_s1 + $0x384] ss:$8 sps:$4 sm:$0xff]  }
  0xb5   : > { %2619 = vmatprep.subr.bf16.mxu0 %v4538_v61  ;;  %v4622_v61 = vld [vmem:[%s6406_s1 + $0x784] ss:$8 sps:$4 sm:$0xff]  }
  0xb7   : > { %2456 = vmatpush1.bf16.msra.mxu1 %v4533_v62  ;;  %v4617_v62 = vld [vmem:[%s6406_s1 + $0x380] ss:$8 sps:$4 sm:$0xff]  }
  0xb8   : > { %2620 = vmatpush1.bf16.msra.mxu0 %v4536_v63  ;;  %2457 = vmatprep.subr.bf16.mxu1 %v4541_v0  ;;  %v4620_v63 = vld [vmem:[%s6406_s1 + $0x780] ss:$8 sps:$4 sm:$0xff]   ;;  %v4625_v0 = vld [vmem:[%s6406_s1 + $0x394] ss:$8 sps:$4 sm:$0xff]  }
  0xb9   : > { %2621 = vmatprep.subr.bf16.mxu0 %v4544_v1  ;;  %v4628_v1 = vld [vmem:[%s6406_s1 + $0x794] ss:$8 sps:$4 sm:$0xff]  }
  0xbb   : > { %2458 = vmatpush1.bf16.msra.mxu1 %v4539_v2  ;;  %v4623_v2 = vld [vmem:[%s6406_s1 + $0x390] ss:$8 sps:$4 sm:$0xff]  }
  0xbc   : > { %2622 = vmatpush1.bf16.msra.mxu0 %v4542_v3  ;;  %2459 = vmatprep.subr.bf16.mxu1 %v4547_v4  ;;  %v4626_v3 = vld [vmem:[%s6406_s1 + $0x790] ss:$8 sps:$4 sm:$0xff]   ;;  %v4631_v4 = vld [vmem:[%s6406_s1 + $0x3a4] ss:$8 sps:$4 sm:$0xff]  }
  0xbd   : > { %2623 = vmatprep.subr.bf16.mxu0 %v4550_v5  ;;  %v4634_v5 = vld [vmem:[%s6406_s1 + $0x7a4] ss:$8 sps:$4 sm:$0xff]  }
  0xbf   : > { %2460 = vmatpush1.bf16.msra.mxu1 %v4545_v6  ;;  %v4629_v6 = vld [vmem:[%s6406_s1 + $0x3a0] ss:$8 sps:$4 sm:$0xff]  }
  0xc0   : > { %2624 = vmatpush1.bf16.msra.mxu0 %v4548_v7  ;;  %2461 = vmatprep.subr.bf16.mxu1 %v4553_v8  ;;  %v4632_v7 = vld [vmem:[%s6406_s1 + $0x7a0] ss:$8 sps:$4 sm:$0xff]   ;;  %v4637_v8 = vld [vmem:[%s6406_s1 + $0x3b4] ss:$8 sps:$4 sm:$0xff]  }
  0xc1   : > { %2625 = vmatprep.subr.bf16.mxu0 %v4556_v9  ;;  %v4640_v9 = vld [vmem:[%s6406_s1 + $0x7b4] ss:$8 sps:$4 sm:$0xff]  }
  0xc3   : > { %2462 = vmatpush1.bf16.msra.mxu1 %v4551_v10  ;;  %v4635_v10 = vld [vmem:[%s6406_s1 + $0x3b0] ss:$8 sps:$4 sm:$0xff]  }
  0xc4   : > { %2626 = vmatpush1.bf16.msra.mxu0 %v4554_v11  ;;  %2463 = vmatprep.subr.bf16.mxu1 %v4559_v12  ;;  %v4638_v11 = vld [vmem:[%s6406_s1 + $0x7b0] ss:$8 sps:$4 sm:$0xff]   ;;  %v4643_v12 = vld [vmem:[%s6406_s1 + $0x3c4] ss:$8 sps:$4 sm:$0xff]  }
  0xc5   : > { %2627 = vmatprep.subr.bf16.mxu0 %v4562_v13  ;;  %v4646_v13 = vld [vmem:[%s6406_s1 + $0x7c4] ss:$8 sps:$4 sm:$0xff]  }
  0xc7   : > { %2464 = vmatpush1.bf16.msra.mxu1 %v4557_v14  ;;  %v4641_v14 = vld [vmem:[%s6406_s1 + $0x3c0] ss:$8 sps:$4 sm:$0xff]  }
  0xc8   : > { %2628 = vmatpush1.bf16.msra.mxu0 %v4560_v15  ;;  %2465 = vmatprep.subr.bf16.mxu1 %v4565_v16  ;;  %v4644_v15 = vld [vmem:[%s6406_s1 + $0x7c0] ss:$8 sps:$4 sm:$0xff]   ;;  %v4649_v16 = vld [vmem:[%s6406_s1 + $0x3d4] ss:$8 sps:$4 sm:$0xff]  }
  0xc9   : > { %2629 = vmatprep.subr.bf16.mxu0 %v4568_v17  ;;  %v4652_v17 = vld [vmem:[%s6406_s1 + $0x7d4] ss:$8 sps:$4 sm:$0xff]  }
  0xcb   : > { %2466 = vmatpush1.bf16.msra.mxu1 %v4563_v18  ;;  %v4647_v18 = vld [vmem:[%s6406_s1 + $0x3d0] ss:$8 sps:$4 sm:$0xff]  }
  0xcc   : > { %2630 = vmatpush1.bf16.msra.mxu0 %v4566_v19  ;;  %2476 = vmatprep.subr.bf16.mxu1 %v4571_v20  ;;  %v4650_v19 = vld [vmem:[%s6406_s1 + $0x7d0] ss:$8 sps:$4 sm:$0xff]   ;;  %v4655_v20 = vld [vmem:[%s6406_s1 + $0x3e4] ss:$8 sps:$4 sm:$0xff]  }
  0xcd   : > { %2640 = vmatprep.subr.bf16.mxu0 %v4574_v23  ;;  %v4656_v23 = vld [vmem:[%s6406_s1 + $0x7e0] ss:$8 sps:$4 sm:$0xff]  }
  0xce   : > { %2468 = vmatmul.mubr.bf16.vlgmr.msra.gmra.mrb[0].mxu1 %v279_v26  ;;  %v4659_v26 = vld [vmem:[%s6406_s1 + $0x3f0] ss:$8 sps:$4 sm:$0xff]  }
  0xcf   : > { %2632 = vmatmul.mubr.bf16.vlgmr.msra.gmra.mrb[0].mxu0 %v287_v27  ;;  %2477 = vmatpush1.bf16.msra.mxu1 %v4569_v24  ;;  %v4661_v24 = vld [vmem:[%s6406_s1 + $0x3f4] ss:$8 sps:$4 sm:$0xff]   ;;  %v4662_v27 = vld [vmem:[%s6406_s1 + $0x7f0] ss:$8 sps:$4 sm:$0xff]  }
  0xd0   : > { %2641 = vmatpush1.bf16.msra.mxu0 %v4572_v25  ;;  %2478 = vmatprep.subr.bf16.mxu1 %v4577_v30  ;;  %v4664_v25 = vld [vmem:[%s6406_s1 + $0x7f4] ss:$8 sps:$4 sm:$0xff]  }
  0xd1   : > { %2642 = vmatprep.subr.bf16.mxu0 %v4580_v31  ;;  %2508 = vmatprep.mubr.bf16.mxu1 %v282_v32  ;;  %v267_v30 = vld [vmem:[%s5182_s11 + $0x70] sm:$0xff]  ;;  %v270_v31 = vld [vmem:[%s5182_s11 + $0x88] sm:$0xff]  ;;  %v281_v32 = vpack.c.bf16 %v259_v28, %v259_v28 }
  0xd2   : > { %2672 = vmatprep.mubr.bf16.mxu0 %v290_v33  ;;  %v289_v33 = vpack.c.bf16 %v267_v30, %v267_v30  ;;  %v4737_v28 = vld [vmem:[%s6406_s1 + $0x980] ss:$8 sps:$4 sm:$0xff]   ;;  %v4742_v30 = vld [vmem:[%s6406_s1 + $0x994] ss:$8 sps:$4 sm:$0xff]  }
  0xd3   : > { %2479 = vmatpush1.bf16.msra.mxu1 %v4575_v34  ;;  %v4665_v34 = vld [vmem:[%s6406_s1 + $0x800] ss:$8 sps:$4 sm:$0xff]  }
  0xd4   : > { %2643 = vmatpush1.bf16.msra.mxu0 %v4578_v35  ;;  %2480 = vmatprep.subr.bf16.mxu1 %v4583_v36  ;;  %v292_v35 = vpack.c.bf16 %v270_v31, %v270_v31  ;;  %v4670_v36 = vld [vmem:[%s6406_s1 + $0x814] ss:$8 sps:$4 sm:$0xff]   ;;  %v4799_v31 = vld [vmem:[%s6407_s2 + $0x4c] ss:$12 sps:$4 sm:$0xff]  }
  0xd5   : > { %2644 = vmatprep.subr.bf16.mxu0 %v4586_v37  ;;  %v4668_v37 = vld [vmem:[%s6406_s1 + $0x810] ss:$8 sps:$4 sm:$0xff]  }
  0xd7   : > { %2481 = vmatpush1.bf16.msra.mxu1 %v4581_v38  ;;  %v4673_v38 = vld [vmem:[%s6406_s1 + $0x824] ss:$8 sps:$4 sm:$0xff]  }
  0xd8   : > { %2645 = vmatpush1.bf16.msra.mxu0 %v4584_v39  ;;  %2482 = vmatprep.subr.bf16.mxu1 %v4589_v40  ;;  %v4671_v39 = vld [vmem:[%s6406_s1 + $0x820] ss:$8 sps:$4 sm:$0xff]   ;;  %v4676_v40 = vld [vmem:[%s6406_s1 + $0x834] ss:$8 sps:$4 sm:$0xff]  }
  0xd9   : > { %2646 = vmatprep.subr.bf16.mxu0 %v4592_v41  ;;  %v4674_v41 = vld [vmem:[%s6406_s1 + $0x830] ss:$8 sps:$4 sm:$0xff]  }
  0xdb   : > { %2483 = vmatpush1.bf16.msra.mxu1 %v4587_v42  ;;  %v4679_v42 = vld [vmem:[%s6406_s1 + $0x844] ss:$8 sps:$4 sm:$0xff]  }
  0xdc   : > { %2647 = vmatpush1.bf16.msra.mxu0 %v4590_v43  ;;  %2484 = vmatprep.subr.bf16.mxu1 %v4595_v44  ;;  %v4677_v43 = vld [vmem:[%s6406_s1 + $0x840] ss:$8 sps:$4 sm:$0xff]   ;;  %v4682_v44 = vld [vmem:[%s6406_s1 + $0x854] ss:$8 sps:$4 sm:$0xff]  }
  0xdd   : > { %2648 = vmatprep.subr.bf16.mxu0 %v4598_v45  ;;  %v4680_v45 = vld [vmem:[%s6406_s1 + $0x850] ss:$8 sps:$4 sm:$0xff]  }
  0xdf   : > { %2485 = vmatpush1.bf16.msra.mxu1 %v4593_v46  ;;  %v4685_v46 = vld [vmem:[%s6406_s1 + $0x864] ss:$8 sps:$4 sm:$0xff]  }
  0xe0   : > { %2649 = vmatpush1.bf16.msra.mxu0 %v4596_v47  ;;  %2486 = vmatprep.subr.bf16.mxu1 %v4601_v48  ;;  %v4683_v47 = vld [vmem:[%s6406_s1 + $0x860] ss:$8 sps:$4 sm:$0xff]   ;;  %v4688_v48 = vld [vmem:[%s6406_s1 + $0x874] ss:$8 sps:$4 sm:$0xff]  }
  0xe1   : > { %2650 = vmatprep.subr.bf16.mxu0 %v4604_v49  ;;  %v4686_v49 = vld [vmem:[%s6406_s1 + $0x870] ss:$8 sps:$4 sm:$0xff]  }
  0xe3   : > { %2487 = vmatpush1.bf16.msra.mxu1 %v4599_v50  ;;  %v4691_v50 = vld [vmem:[%s6406_s1 + $0x884] ss:$8 sps:$4 sm:$0xff]  }
  0xe4   : > { %2651 = vmatpush1.bf16.msra.mxu0 %v4602_v51  ;;  %2488 = vmatprep.subr.bf16.mxu1 %v4607_v52  ;;  %v4689_v51 = vld [vmem:[%s6406_s1 + $0x880] ss:$8 sps:$4 sm:$0xff]   ;;  %v4694_v52 = vld [vmem:[%s6406_s1 + $0x894] ss:$8 sps:$4 sm:$0xff]  }
  0xe5   : > { %2652 = vmatprep.subr.bf16.mxu0 %v4610_v53  ;;  %v4692_v53 = vld [vmem:[%s6406_s1 + $0x890] ss:$8 sps:$4 sm:$0xff]  }
  0xe7   : > { %2489 = vmatpush1.bf16.msra.mxu1 %v4605_v54  ;;  %v4697_v54 = vld [vmem:[%s6406_s1 + $0x8a4] ss:$8 sps:$4 sm:$0xff]  }
  0xe8   : > { %2653 = vmatpush1.bf16.msra.mxu0 %v4608_v55  ;;  %2490 = vmatprep.subr.bf16.mxu1 %v4613_v56  ;;  %v4695_v55 = vld [vmem:[%s6406_s1 + $0x8a0] ss:$8 sps:$4 sm:$0xff]   ;;  %v4700_v56 = vld [vmem:[%s6406_s1 + $0x8b4] ss:$8 sps:$4 sm:$0xff]  }
  0xe9   : > { %2654 = vmatprep.subr.bf16.mxu0 %v4616_v57  ;;  %v4698_v57 = vld [vmem:[%s6406_s1 + $0x8b0] ss:$8 sps:$4 sm:$0xff]  }
  0xeb   : > { %2491 = vmatpush1.bf16.msra.mxu1 %v4611_v58  ;;  %v4703_v58 = vld [vmem:[%s6406_s1 + $0x8c4] ss:$8 sps:$4 sm:$0xff]  }
  0xec   : > { %2655 = vmatpush1.bf16.msra.mxu0 %v4614_v59  ;;  %2492 = vmatprep.subr.bf16.mxu1 %v4619_v60  ;;  %v4701_v59 = vld [vmem:[%s6406_s1 + $0x8c0] ss:$8 sps:$4 sm:$0xff]   ;;  %v4706_v60 = vld [vmem:[%s6406_s1 + $0x8d4] ss:$8 sps:$4 sm:$0xff]  }
  0xed   : > { %2656 = vmatprep.subr.bf16.mxu0 %v4622_v61  ;;  %v4704_v61 = vld [vmem:[%s6406_s1 + $0x8d0] ss:$8 sps:$4 sm:$0xff]  }
  0xef   : > { %2493 = vmatpush1.bf16.msra.mxu1 %v4617_v62  ;;  %v4709_v62 = vld [vmem:[%s6406_s1 + $0x8e4] ss:$8 sps:$4 sm:$0xff]  }
  0xf0   : > { %2657 = vmatpush1.bf16.msra.mxu0 %v4620_v63  ;;  %2494 = vmatprep.subr.bf16.mxu1 %v4625_v0  ;;  %v4707_v63 = vld [vmem:[%s6406_s1 + $0x8e0] ss:$8 sps:$4 sm:$0xff]   ;;  %v4712_v0 = vld [vmem:[%s6406_s1 + $0x8f4] ss:$8 sps:$4 sm:$0xff]  }
  0xf1   : > { %2658 = vmatprep.subr.bf16.mxu0 %v4628_v1  ;;  %v4710_v1 = vld [vmem:[%s6406_s1 + $0x8f0] ss:$8 sps:$4 sm:$0xff]  }
  0xf3   : > { %2495 = vmatpush1.bf16.msra.mxu1 %v4623_v2  ;;  %v269_v2 = vld [vmem:[%s5182_s11 + $0x80] sm:$0xff] }
  0xf4   : > { %2659 = vmatpush1.bf16.msra.mxu0 %v4626_v3  ;;  %2496 = vmatprep.subr.bf16.mxu1 %v4631_v4  ;;  %v4715_v3 = vld [vmem:[%s6406_s1 + $0x904] ss:$8 sps:$4 sm:$0xff]   ;;  %v272_v4 = vld [vmem:[%s5182_s11 + $0x98] sm:$0xff] }
  0xf5   : > { %2660 = vmatprep.subr.bf16.mxu0 %v4634_v5  ;;  %v291_v5 = vpack.c.bf16 %v269_v2, %v269_v2  ;;  %v4818_v2 = vld [vmem:[%s6407_s2 + $0xf0] ss:$12 sps:$4 sm:$0xff]  }
  0xf7   : > { %2497 = vmatpush1.bf16.msra.mxu1 %v4629_v6  ;;  %v4713_v6 = vld [vmem:[%s6406_s1 + $0x900] ss:$8 sps:$4 sm:$0xff]  }
  0xf8   : > { %2661 = vmatpush1.bf16.msra.mxu0 %v4632_v7  ;;  %2498 = vmatprep.subr.bf16.mxu1 %v4637_v8  ;;  %v294_v7 = vpack.c.bf16 %v272_v4, %v272_v4  ;;  %v4718_v8 = vld [vmem:[%s6406_s1 + $0x914] ss:$8 sps:$4 sm:$0xff]   ;;  %v4764_v4 = vld [vmem:[%s6406_s1 + $0xa10] ss:$8 sps:$4 sm:$0xff]  }
  0xf9   : > { %2662 = vmatprep.subr.bf16.mxu0 %v4640_v9  ;;  %v4716_v9 = vld [vmem:[%s6406_s1 + $0x910] ss:$8 sps:$4 sm:$0xff]  }
  0xfb   : > { %2499 = vmatpush1.bf16.msra.mxu1 %v4635_v10  ;;  %v4721_v10 = vld [vmem:[%s6406_s1 + $0x924] ss:$8 sps:$4 sm:$0xff]  }
  0xfc   : > { %2663 = vmatpush1.bf16.msra.mxu0 %v4638_v11  ;;  %2500 = vmatprep.subr.bf16.mxu1 %v4643_v12  ;;  %v4719_v11 = vld [vmem:[%s6406_s1 + $0x920] ss:$8 sps:$4 sm:$0xff]   ;;  %v4724_v12 = vld [vmem:[%s6406_s1 + $0x934] ss:$8 sps:$4 sm:$0xff]  }
  0xfd   : > { %2664 = vmatprep.subr.bf16.mxu0 %v4646_v13  ;;  %v4722_v13 = vld [vmem:[%s6406_s1 + $0x930] ss:$8 sps:$4 sm:$0xff]  }
  0xff   : > { %2501 = vmatpush1.bf16.msra.mxu1 %v4641_v14  ;;  %v4727_v14 = vld [vmem:[%s6406_s1 + $0x944] ss:$8 sps:$4 sm:$0xff]  }
 0x100   : > { %2665 = vmatpush1.bf16.msra.mxu0 %v4644_v15  ;;  %2502 = vmatprep.subr.bf16.mxu1 %v4649_v16  ;;  %v4725_v15 = vld [vmem:[%s6406_s1 + $0x940] ss:$8 sps:$4 sm:$0xff]   ;;  %v4730_v16 = vld [vmem:[%s6406_s1 + $0x954] ss:$8 sps:$4 sm:$0xff]  }
 0x101   : > { %2666 = vmatprep.subr.bf16.mxu0 %v4652_v17  ;;  %v4728_v17 = vld [vmem:[%s6406_s1 + $0x950] ss:$8 sps:$4 sm:$0xff]  }
 0x103   : > { %2503 = vmatpush1.bf16.msra.mxu1 %v4647_v18  ;;  %v4733_v18 = vld [vmem:[%s6406_s1 + $0x964] ss:$8 sps:$4 sm:$0xff]  }
 0x104   : > { %2667 = vmatpush1.bf16.msra.mxu0 %v4650_v19  ;;  %2504 = vmatprep.subr.bf16.mxu1 %v4655_v20  ;;  %v4731_v19 = vld [vmem:[%s6406_s1 + $0x960] ss:$8 sps:$4 sm:$0xff]   ;;  %v4736_v20 = vld [vmem:[%s6406_s1 + $0x974] ss:$8 sps:$4 sm:$0xff]  }
 0x105   : > { %2668 = vmatprep.subr.bf16.mxu0 %v4658_v21  ;;  %v4788_v21 = vld [vmem:[%s6407_s2] ss:$12 sps:$4 sm:$0xff]  }
 0x107   : > { %2505 = vmatpush1.bf16.msra.mxu1 %v4653_v22  ;;  %v4790_v22 = vld [vmem:[%s6407_s2 + $0x4] ss:$12 sps:$4 sm:$0xff]  }
 0x108   : > { %2669 = vmatpush1.bf16.msra.mxu0 %v4656_v23  ;;  %2506 = vmatprep.subr.bf16.mxu1 %v4661_v24  ;;  %v4793_v23 = vld [vmem:[%s6407_s2 + $0x1c] ss:$12 sps:$4 sm:$0xff]   ;;  %v4734_v24 = vld [vmem:[%s6406_s1 + $0x970] ss:$8 sps:$4 sm:$0xff]  }
 0x109   : > { %2670 = vmatprep.subr.bf16.mxu0 %v4664_v25  ;;  %v4791_v25 = vld [vmem:[%s6407_s2 + $0x18] ss:$12 sps:$4 sm:$0xff]  }
 0x10b   : > { %2507 = vmatpush1.bf16.msra.mxu1 %v4659_v26  ;;  %v4739_v26 = vld [vmem:[%s6406_s1 + $0x984] ss:$8 sps:$4 sm:$0xff]  }
 0x10c   : > { %2671 = vmatpush1.bf16.msra.mxu0 %v4662_v27  ;;  %3156 = vmatprep.subr.bf16.mxu1 %v4790_v22  ;;  %v4796_v27 = vld [vmem:[%s6407_s2 + $0x34] ss:$12 sps:$4 sm:$0xff]   ;;  %v4785_v22 = vld [vmem:[%s6406_s1 + $0xa84] ss:$8 sps:$4 sm:$0x3f]  }
 0x10d   : > { %2681 = vmatprep.subr.bf16.mxu0 %v4667_v29  ;;  %v4794_v29 = vld [vmem:[%s6407_s2 + $0x30] ss:$12 sps:$4 sm:$0xff]  }
 0x10e   : > { %2509 = vmatmul.mubr.bf16.vlgmr.msra.gmra.mrb[0].mxu1 %v281_v32  ;;  %v4740_v32 = vld [vmem:[%s6406_s1 + $0x990] ss:$8 sps:$4 sm:$0xff]  }
 0x10f   : > { %2673 = vmatmul.mubr.bf16.vlgmr.msra.gmra.mrb[0].mxu0 %v289_v33  ;;  %3157 = vmatpush1.bf16.msra.mxu1 %v4788_v21  ;;  %v4797_v33 = vld [vmem:[%s6407_s2 + $0x48] ss:$12 sps:$4 sm:$0xff]   ;;  %v4782_v21 = vld [vmem:[%s6406_s1 + $0xa70] ss:$8 sps:$4 sm:$0xff]  }
 0x110   : > { %2682 = vmatpush1.bf16.msra.mxu0 %v4665_v34  ;;  %2713 = vmatprep.mubr.bf16.mxu0 %v292_v35  ;;  %v4745_v34 = vld [vmem:[%s6406_s1 + $0x9a4] ss:$8 sps:$4 sm:$0xff]  }
 0x111   : > { %2683 = vmatprep.subr.bf16.mxu0 %v4670_v36  ;;  %3158 = vmatprep.subr.bf16.mxu1 %v4793_v23  ;;  %v4802_v35 = vld [vmem:[%s6407_s2 + $0x64] ss:$12 sps:$4 sm:$0xff]   ;;  %v4743_v36 = vld [vmem:[%s6406_s1 + $0x9a0] ss:$8 sps:$4 sm:$0xff]  }
 0x112   : > { %v4787_v23 = vld [vmem:[%s6406_s1 + $0xa80] ss:$8 sps:$4 sm:$0x3f]  }
 0x113   : > { %3159 = vmatpush1.bf16.msra.mxu1 %v4791_v25  ;;  %v2348_v25 = vsel %vm2346_vm1, %v4787_v23, 0  ;;  %v4867_v23 = vld [vmem:[%s6408_s3 + $0x38] sm:$0xff]  }
 0x114   : > { %2684 = vmatpush1.bf16.msra.mxu0 %v4668_v37  ;;  %3160 = vmatprep.subr.bf16.mxu1 %v4796_v27  ;;  %v4800_v37 = vld [vmem:[%s6407_s2 + $0x60] ss:$12 sps:$4 sm:$0xff]  }
 0x115   : > { %2685 = vmatprep.subr.bf16.mxu0 %v4673_v38  ;;  %v4748_v38 = vld [vmem:[%s6406_s1 + $0x9b4] ss:$8 sps:$4 sm:$0xff]  }
 0x117   : > { %3161 = vmatpush1.bf16.msra.mxu1 %v4794_v29 }
 0x118   : > { %2686 = vmatpush1.bf16.msra.mxu0 %v4671_v39  ;;  %3162 = vmatprep.subr.bf16.mxu1 %v4799_v31  ;;  %v4805_v39 = vld [vmem:[%s6407_s2 + $0x7c] ss:$12 sps:$4 sm:$0xff]   ;;  %v4832_v31 = vld [vmem:[%s6407_s2 + $0x154] ss:$12 sps:$4 sm:$0xff]  }
 0x119   : > { %2687 = vmatprep.subr.bf16.mxu0 %v4676_v40  ;;  %v4746_v40 = vld [vmem:[%s6406_s1 + $0x9b0] ss:$8 sps:$4 sm:$0xff]  }
 0x11b   : > { %3163 = vmatpush1.bf16.msra.mxu1 %v4797_v33  ;;  %v4835_v33 = vld [vmem:[%s6407_s2 + $0x16c] ss:$12 sps:$4 sm:$0xff]  }
 0x11c   : > { %2688 = vmatpush1.bf16.msra.mxu0 %v4674_v41  ;;  %3164 = vmatprep.subr.bf16.mxu1 %v4802_v35  ;;  %v4803_v41 = vld [vmem:[%s6407_s2 + $0x78] ss:$12 sps:$4 sm:$0xff]   ;;  %v4836_v35 = vld [vmem:[%s6407_s2 + $0xc8] ss:$12 sps:$4 sm:$0xff]  }
 0x11d   : > { %2689 = vmatprep.subr.bf16.mxu0 %v4679_v42  ;;  %v4751_v42 = vld [vmem:[%s6406_s1 + $0x9c4] ss:$8 sps:$4 sm:$0xff]  }
 0x11f   : > { %3165 = vmatpush1.bf16.msra.mxu1 %v4800_v37 }
 0x120   : > { %2690 = vmatpush1.bf16.msra.mxu0 %v4677_v43  ;;  %3166 = vmatprep.subr.bf16.mxu1 %v4805_v39  ;;  %v4808_v43 = vld [vmem:[%s6407_s2 + $0x94] ss:$12 sps:$4 sm:$0xff]  }
 0x121   : > { %2691 = vmatprep.subr.bf16.mxu0 %v4682_v44  ;;  %v4749_v44 = vld [vmem:[%s6406_s1 + $0x9c0] ss:$8 sps:$4 sm:$0xff]  }
 0x122   : > { %v6193_v39 = vld [vmem:[%s6410_s5] sm:$0xff] }
 0x123   : > { %3167 = vmatpush1.bf16.msra.mxu1 %v4803_v41 }
 0x124   : > { %2692 = vmatpush1.bf16.msra.mxu0 %v4680_v45  ;;  %v4806_v45 = vld [vmem:[%s6407_s2 + $0x90] ss:$12 sps:$4 sm:$0xff]   ;;  %3168 = vmatprep.subr.bf16.mxu1 %v4808_v43 }
 0x125   : > { %2693 = vmatprep.subr.bf16.mxu0 %v4685_v46  ;;  %v4754_v46 = vld [vmem:[%s6406_s1 + $0x9d4] ss:$8 sps:$4 sm:$0xff]  }
 0x127   : > { %3169 = vmatpush1.bf16.msra.mxu1 %v4806_v45 }
 0x128   : > { %2694 = vmatpush1.bf16.msra.mxu0 %v4683_v47  ;;  %v4811_v47 = vld [vmem:[%s6407_s2 + $0xac] ss:$12 sps:$4 sm:$0xff]  }
 0x129   : > { %2695 = vmatprep.subr.bf16.mxu0 %v4688_v48  ;;  %v4752_v48 = vld [vmem:[%s6406_s1 + $0x9d0] ss:$8 sps:$4 sm:$0xff]   ;;  %3170 = vmatprep.subr.bf16.mxu1 %v4811_v47 }
 0x12c   : > { %2696 = vmatpush1.bf16.msra.mxu0 %v4686_v49  ;;  %v4809_v49 = vld [vmem:[%s6407_s2 + $0xa8] ss:$12 sps:$4 sm:$0xff]  }
 0x12d   : > { %2697 = vmatprep.subr.bf16.mxu0 %v4691_v50  ;;  %v4757_v50 = vld [vmem:[%s6406_s1 + $0x9e4] ss:$8 sps:$4 sm:$0xff]   ;;  %3171 = vmatpush1.bf16.msra.mxu1 %v4809_v49 }
 0x130   : > { %2698 = vmatpush1.bf16.msra.mxu0 %v4689_v51  ;;  %v4814_v51 = vld [vmem:[%s6407_s2 + $0xc4] ss:$12 sps:$4 sm:$0xff]  }
 0x131   : > { %2699 = vmatprep.subr.bf16.mxu0 %v4694_v52  ;;  %v4755_v52 = vld [vmem:[%s6406_s1 + $0x9e0] ss:$8 sps:$4 sm:$0xff]   ;;  %3172 = vmatprep.subr.bf16.mxu1 %v4814_v51 }
 0x134   : > { %2700 = vmatpush1.bf16.msra.mxu0 %v4692_v53  ;;  %v4812_v53 = vld [vmem:[%s6407_s2 + $0xc0] ss:$12 sps:$4 sm:$0xff]  }
 0x135   : > { %2701 = vmatprep.subr.bf16.mxu0 %v4697_v54  ;;  %v4760_v54 = vld [vmem:[%s6406_s1 + $0x9f4] ss:$8 sps:$4 sm:$0xff]   ;;  %3173 = vmatpush1.bf16.msra.mxu1 %v4812_v53 }
 0x138   : > { %2702 = vmatpush1.bf16.msra.mxu0 %v4695_v55  ;;  %v4817_v55 = vld [vmem:[%s6407_s2 + $0xdc] ss:$12 sps:$4 sm:$0xff]  }
 0x139   : > { %2703 = vmatprep.subr.bf16.mxu0 %v4700_v56  ;;  %v4758_v56 = vld [vmem:[%s6406_s1 + $0x9f0] ss:$8 sps:$4 sm:$0xff]   ;;  %3174 = vmatprep.subr.bf16.mxu1 %v4817_v55 }
 0x13c   : > { %2704 = vmatpush1.bf16.msra.mxu0 %v4698_v57  ;;  %v271_v57 = vld [vmem:[%s5182_s11 + $0x90] sm:$0xff] }
 0x13d   : > { %2705 = vmatprep.subr.bf16.mxu0 %v4703_v58  ;;  %v4815_v58 = vld [vmem:[%s6407_s2 + $0xd8] ss:$12 sps:$4 sm:$0xff]  }
 0x13e   : > { %3175 = vmatpush1.bf16.msra.mxu1 %v4815_v58  ;;  %v4838_v58 = vld [vmem:[%s6407_s2 + $0xe0] ss:$12 sps:$4 sm:$0xff]  }
 0x140   : > { %2706 = vmatpush1.bf16.msra.mxu0 %v4701_v59  ;;  %v4763_v59 = vld [vmem:[%s6406_s1 + $0xa04] ss:$8 sps:$4 sm:$0xff]  }
 0x141   : > { %2707 = vmatprep.subr.bf16.mxu0 %v4706_v60  ;;  %v274_v60 = vld [vmem:[%s5182_s11 + $0xa8] sm:$0xff] }
 0x144   : > { %2708 = vmatpush1.bf16.msra.mxu0 %v4704_v61  ;;  %v4820_v61 = vld [vmem:[%s6407_s2 + $0xf4] ss:$12 sps:$4 sm:$0xff]  }
 0x145   : > { %2709 = vmatprep.subr.bf16.mxu0 %v4709_v62  ;;  %v293_v62 = vpack.c.bf16 %v271_v57, %v271_v57  ;;  %3176 = vmatprep.subr.bf16.mxu1 %v4820_v61  ;;  %v4841_v61 = vld [vmem:[%s6407_s2 + $0x38] ss:$12 sps:$4 sm:$0xff]  }
 0x146   : > { %3177 = vmatpush1.bf16.msra.mxu1 %v4818_v2  ;;  %v4846_v2 = vld [vmem:[%s6407_s2 + $0x140] ss:$12 sps:$4 sm:$0xff]  }
 0x148   : > { %2710 = vmatpush1.bf16.msra.mxu0 %v4707_v63  ;;  %v4761_v63 = vld [vmem:[%s6406_s1 + $0xa00] ss:$8 sps:$4 sm:$0xff]  }
 0x149   : > { %2711 = vmatprep.subr.bf16.mxu0 %v4712_v0  ;;  %v296_v0 = vpack.c.bf16 %v274_v60, %v274_v60  ;;  %v4840_v60 = vld [vmem:[%s6407_s2 + $0xf8] ss:$12 sps:$4 sm:$0xff]  }
 0x14c   : > { %2712 = vmatpush1.bf16.msra.mxu0 %v4710_v1  ;;  %v4766_v1 = vld [vmem:[%s6406_s1 + $0xa14] ss:$8 sps:$4 sm:$0xff]  }
 0x14d   : > { %2722 = vmatprep.subr.bf16.mxu0 %v4715_v3  ;;  %v4823_v3 = vld [vmem:[%s6407_s2 + $0x10c] ss:$12 sps:$4 sm:$0xff]  }
 0x14e   : > { %3178 = vmatprep.subr.bf16.mxu1 %v4823_v3  ;;  %v4847_v3 = vld [vmem:[%s6407_s2 + $0x80] ss:$12 sps:$4 sm:$0xff]  }
 0x14f   : > { %2714 = vmatmul.mubr.bf16.vlgmr.msra.gmra.mrb[0].mxu0 %v291_v5  ;;  %v4769_v5 = vld [vmem:[%s6406_s1 + $0xa24] ss:$8 sps:$4 sm:$0xff]  }
 0x150   : > { %2723 = vmatpush1.bf16.msra.mxu0 %v4713_v6  ;;  %2754 = vmatprep.mubr.bf16.mxu0 %v294_v7  ;;  %v4821_v6 = vld [vmem:[%s6407_s2 + $0x108] ss:$12 sps:$4 sm:$0xff]   ;;  %v4826_v7 = vld [vmem:[%s6407_s2 + $0x124] ss:$12 sps:$4 sm:$0xff]  }
 0x151   : > { %2724 = vmatprep.subr.bf16.mxu0 %v4718_v8  ;;  %v4767_v8 = vld [vmem:[%s6406_s1 + $0xa20] ss:$8 sps:$4 sm:$0xff]   ;;  %3179 = vmatpush1.bf16.msra.mxu1 %v4821_v6  ;;  %v4850_v6 = vld [vmem:[%s6407_s2 + $0x170] ss:$12 sps:$4 sm:$0xff]  }
 0x152   : > { %3180 = vmatprep.subr.bf16.mxu1 %v4826_v7  ;;  %v4851_v7 = vld [vmem:[%s6407_s2 + $0xb0] ss:$12 sps:$4 sm:$0xff]  }
 0x154   : > { %2725 = vmatpush1.bf16.msra.mxu0 %v4716_v9  ;;  %v4772_v9 = vld [vmem:[%s6406_s1 + $0xa34] ss:$8 sps:$4 sm:$0xff]  }
 0x155   : > { %2726 = vmatprep.subr.bf16.mxu0 %v4721_v10  ;;  %v4824_v10 = vld [vmem:[%s6407_s2 + $0x120] ss:$12 sps:$4 sm:$0xff]  }
 0x156   : > { %3181 = vmatpush1.bf16.msra.mxu1 %v4824_v10  ;;  %v4854_v10 = vld [vmem:[%s6408_s3 + $0x48] sm:$0xff]  }
 0x158   : > { %2727 = vmatpush1.bf16.msra.mxu0 %v4719_v11  ;;  %v4829_v11 = vld [vmem:[%s6407_s2 + $0x13c] ss:$12 sps:$4 sm:$0xff]  }
 0x159   : > { %2728 = vmatprep.subr.bf16.mxu0 %v4724_v12  ;;  %v4770_v12 = vld [vmem:[%s6406_s1 + $0xa30] ss:$8 sps:$4 sm:$0xff]   ;;  %3182 = vmatprep.subr.bf16.mxu1 %v4829_v11  ;;  %v4855_v11 = vld [vmem:[%s6408_s3 + $0x8] sm:$0xff]  }
 0x15c   : > { %2729 = vmatpush1.bf16.msra.mxu0 %v4722_v13  ;;  %v4775_v13 = vld [vmem:[%s6406_s1 + $0xa44] ss:$8 sps:$4 sm:$0xff]  }
 0x15d   : > { %2730 = vmatprep.subr.bf16.mxu0 %v4727_v14  ;;  %v4827_v14 = vld [vmem:[%s6407_s2 + $0x138] ss:$12 sps:$4 sm:$0xff]  }
 0x15e   : > { %3183 = vmatpush1.bf16.msra.mxu1 %v4827_v14  ;;  %v4858_v14 = vld [vmem:[%s6408_s3 + $0x58] sm:$0xff]  }
 0x15f   : > { %3184 = vmatprep.subr.bf16.mxu1 %v4832_v31 }
 0x160   : > { %2731 = vmatpush1.bf16.msra.mxu0 %v4725_v15  ;;  %v4773_v15 = vld [vmem:[%s6406_s1 + $0xa40] ss:$8 sps:$4 sm:$0xff]  }
 0x161   : > { %2732 = vmatprep.subr.bf16.mxu0 %v4730_v16  ;;  %v4778_v16 = vld [vmem:[%s6406_s1 + $0xa54] ss:$8 sps:$4 sm:$0xff]  }
 0x164   : > { %2733 = vmatpush1.bf16.msra.mxu0 %v4728_v17  ;;  %v4776_v17 = vld [vmem:[%s6406_s1 + $0xa50] ss:$8 sps:$4 sm:$0xff]  }
 0x165   : > { %2734 = vmatprep.subr.bf16.mxu0 %v4733_v18  ;;  %v4781_v18 = vld [vmem:[%s6406_s1 + $0xa64] ss:$8 sps:$4 sm:$0xff]  }
 0x168   : > { %2735 = vmatpush1.bf16.msra.mxu0 %v4731_v19  ;;  %v4779_v19 = vld [vmem:[%s6406_s1 + $0xa60] ss:$8 sps:$4 sm:$0xff]  }
 0x169   : > { %2736 = vmatprep.subr.bf16.mxu0 %v4736_v20  ;;  %v4784_v20 = vld [vmem:[%s6406_s1 + $0xa74] ss:$8 sps:$4 sm:$0xff]  }
 0x16c   : > { %2737 = vmatpush1.bf16.msra.mxu0 %v4734_v24  ;;  %v273_v24 = vld [vmem:[%s5182_s11 + $0xa0] sm:$0xff] }
 0x16d   : > { %2738 = vmatprep.subr.bf16.mxu0 %v4739_v26  ;;  %v295_v26 = vpack.c.bf16 %v273_v24, %v273_v24  ;;  %v4958_v24 = vmov 0.0  }
 0x170   : > { %2739 = vmatpush1.bf16.msra.mxu0 %v4737_v28 }
 0x171   : > { %2740 = vmatprep.subr.bf16.mxu0 %v4742_v30 }
 0x174   : > { %2741 = vmatpush1.bf16.msra.mxu0 %v4740_v32  ;;  %v4830_v32 = vld [vmem:[%s6407_s2 + $0x150] ss:$12 sps:$4 sm:$0xff]  }
 0x175   : > { %2742 = vmatprep.subr.bf16.mxu0 %v4745_v34  ;;  %3185 = vmatpush1.bf16.msra.mxu1 %v4830_v32  ;;  %v4833_v34 = vld [vmem:[%s6407_s2 + $0x168] ss:$12 sps:$4 sm:$0xff]  }
 0x176   : > { %3186 = vmatprep.subr.bf16.mxu1 %v4835_v33 }
 0x178   : > { %2743 = vmatpush1.bf16.msra.mxu0 %v4743_v36  ;;  %v636_v36 = vlaneseq }
 0x179   : > { %2744 = vmatprep.subr.bf16.mxu0 %v4748_v38  ;;  %3187 = vmatpush1.bf16.msra.mxu1 %v4833_v34 }
 0x17a   : > { %4143 = vmatprep.subr.bf16.mxu1 %v4836_v35  ;;  %v6187_v37 = vshrl.u32 %v636_v36, 7 }
 0x17c   : > { %2745 = vmatpush1.bf16.msra.mxu0 %v4746_v40  ;;  %v638_v38 = vsub.s32 0, %v6187_v37  ;;  %v642_v40 = vsub.s32 4, %v6187_v37 }
 0x17d   : > { %2746 = vmatprep.subr.bf16.mxu0 %v4751_v42 }
 0x17e   : > { %v639_v41 = vrot.slane %v6193_v39, %v638_v38  ;;  %v643_v42 = vrot.slane %v6193_v39, %v642_v40 }
 0x180   : > { %2747 = vmatpush1.bf16.msra.mxu0 %v4749_v44  ;;  %v649_v43 = vrot.slane %v639_v41, %v638_v38  ;;  %v653_v44 = vrot.slane %v643_v42, %v638_v38  ;;  %v4868_v42 = vld [vmem:[%s6408_s3 + $0x80] sm:$0xff]  }
 0x181   : > { %2748 = vmatprep.subr.bf16.mxu0 %v4754_v46 }
 0x184   : > { %2749 = vmatpush1.bf16.msra.mxu0 %v4752_v48 }
 0x185   : > { %2750 = vmatprep.subr.bf16.mxu0 %v4757_v50 }
 0x188   : > { %2751 = vmatpush1.bf16.msra.mxu0 %v4755_v52 }
 0x189   : > { %2752 = vmatprep.subr.bf16.mxu0 %v4760_v54 }
 0x18c   : > { %2753 = vmatpush1.bf16.msra.mxu0 %v4758_v56  ;;  %v4837_v56 = vld [vmem:[%s6407_s2 + $0x8] ss:$12 sps:$4 sm:$0xff]  }
 0x18d   : > { %2763 = vmatprep.subr.bf16.mxu0 %v4763_v59  ;;  %v4839_v59 = vld [vmem:[%s6407_s2 + $0x20] ss:$12 sps:$4 sm:$0xff]  }
 0x18f   : > { %2755 = vmatmul.mubr.bf16.vlgmr.msra.gmra.mrb[0].mxu0 %v293_v62  ;;  %v4842_v62 = vld [vmem:[%s6407_s2 + $0x110] ss:$12 sps:$4 sm:$0xff]  }
 0x190   : > { %2764 = vmatpush1.bf16.msra.mxu0 %v4761_v63  ;;  %4053 = vmatprep.mubr.msk.bf16.mxu0 %vm2342_vm0, %v296_v0  ;;  %v4843_v63 = vld [vmem:[%s6407_s2 + $0x50] ss:$12 sps:$4 sm:$0xff]   ;;  %v4844_v0 = vld [vmem:[%s6407_s2 + $0x128] ss:$12 sps:$4 sm:$0xff]  }
 0x191   : > { %2765 = vmatprep.subr.bf16.mxu0 %v4766_v1  ;;  %v4845_v1 = vld [vmem:[%s6407_s2 + $0x68] ss:$12 sps:$4 sm:$0xff]  }
 0x194   : > { %2766 = vmatpush1.bf16.msra.mxu0 %v4764_v4  ;;  %v4848_v4 = vld [vmem:[%s6407_s2 + $0x158] ss:$12 sps:$4 sm:$0xff]  }
 0x195   : > { %2767 = vmatprep.subr.bf16.mxu0 %v4769_v5  ;;  %v4849_v5 = vld [vmem:[%s6407_s2 + $0x98] ss:$12 sps:$4 sm:$0xff]  }
 0x198   : > { %2768 = vmatpush1.bf16.msra.mxu0 %v4767_v8  ;;  %v4852_v8 = vld [vmem:[%s6408_s3 + $0x40] sm:$0xff]  }
 0x199   : > { %2769 = vmatprep.subr.bf16.mxu0 %v4772_v9  ;;  %v4853_v9 = vld [vmem:[%s6408_s3] sm:$0xff]  }
 0x19c   : > { %2770 = vmatpush1.bf16.msra.mxu0 %v4770_v12  ;;  %v4856_v12 = vld [vmem:[%s6408_s3 + $0x50] sm:$0xff]  }
 0x19d   : > { %2771 = vmatprep.subr.bf16.mxu0 %v4775_v13  ;;  %v4857_v13 = vld [vmem:[%s6408_s3 + $0x10] sm:$0xff]  }
 0x1a0   : > { %2772 = vmatpush1.bf16.msra.mxu0 %v4773_v15  ;;  %v4859_v15 = vld [vmem:[%s6408_s3 + $0x18] sm:$0xff]  }
 0x1a1   : > { %2773 = vmatprep.subr.bf16.mxu0 %v4778_v16  ;;  %v4860_v16 = vld [vmem:[%s6408_s3 + $0x60] sm:$0xff]  }
 0x1a4   : > { %2774 = vmatpush1.bf16.msra.mxu0 %v4776_v17  ;;  %v4861_v17 = vld [vmem:[%s6408_s3 + $0x20] sm:$0xff]  }
 0x1a5   : > { %2775 = vmatprep.subr.bf16.mxu0 %v4781_v18  ;;  %v4862_v18 = vld [vmem:[%s6408_s3 + $0x68] sm:$0xff]  }
 0x1a8   : > { %2776 = vmatpush1.bf16.msra.mxu0 %v4779_v19  ;;  %v4863_v19 = vld [vmem:[%s6408_s3 + $0x28] sm:$0xff]  }
 0x1a9   : > { %2777 = vmatprep.subr.bf16.mxu0 %v4784_v20  ;;  %v4864_v20 = vld [vmem:[%s6408_s3 + $0x70] sm:$0xff]  }
 0x1ac   : > { %2778 = vmatpush1.bf16.msra.mxu0 %v4782_v21  ;;  %v4865_v21 = vld [vmem:[%s6408_s3 + $0x30] sm:$0xff]  }
 0x1ad   : > { %4052 = vmatprep.subr.msk.bf16.mxu0 %vm2346_vm1, %v4785_v22  ;;  %v4866_v22 = vld [vmem:[%s6408_s3 + $0x78] sm:$0xff]  }
 0x1b0   : > { %2780 = vmatpush1.bf16.msra.mxu0 %v2348_v25  ;;  %v2875_v25 = vsub.s32 1, %v6187_v37 }
 0x1b3   : > { %2796 = vmatmul.mubr.bf16.vlgmr.msra.gmra.mrb[0].mxu0 %v295_v26  ;;  %v2879_v26 = vsub.s32 5, %v6187_v37 }
 0x1e1   : > { %v2510_v27 = vpop.f32.mrb[0].mxu1 }
 0x1e2   : > { %v2512_v28 = vpop.f32.mrb[1].mxu1  ;;  %v4198_v45 = vadd.f32 %v2510_v27, %v649_v43  ;;  %v2876_v27 = vrot.slane %v6193_v39, %v2875_v25 }
 0x1e3   : > { %v2514_v29 = vpop.f32.mrb[2].mxu1  ;;  %v4200_v46 = vadd.f32 %v2512_v28, %v653_v44  ;;  %v2880_v28 = vrot.slane %v6193_v39, %v2879_v26  ;;  %v4869_v44 = vld [vmem:[%s6408_s3 + $0x88] sm:$0xff]  }
 0x1e4   : > { %v2515_v30 = vpop.f32.mrb[3].mxu1  ;;  %v2891_v29 = vrot.slane %v2876_v27, %v2875_v25 }
 0x1e5   : > { %v2895_v30 = vrot.slane %v2880_v28, %v2875_v25 }
 0x286   : > { %v2797_v47 = vpop.f32.mrb[0].mxu0 }
 0x287   : > { %v4199_v48 = vadd.f32 %v4198_v45, %v2797_v47  ;;  %v2799_v49 = vpop.f32.mrb[1].mxu0  ;;  %v252_v45 = vld [vmem:[%s6410_s5 + $0x8] sm:$0xf] }
 0x288   : > { %v4201_v50 = vadd.f32 %v4200_v46, %v2799_v49  ;;  %v2801_v51 = vpop.f32.mrb[2].mxu0  ;;  %v2884_v46 = vrot.slane %v252_v45, %v2875_v25 }
 0x289   : > { %v2804_v52 = vmax.f32 %v4199_v48, 0.0  ;;  %v2802_v53 = vpop.f32.mrb[3].mxu0 }
 0x28a   : > { %v2805_v54 = vmax.f32 %v4201_v50, 0.0  ;;  %v2899_v48 = vrot.slane %v2884_v46, %v2875_v25  ;;  %v3499_v25 = vsub.s32 7, %v6187_v37 }
 0x28b   : > { %v2806_v57 = vpack.c.bf16 %v2804_v52, %v2804_v52 }
 0x28c   : > { %v2807_v55 = vpack.c.bf16 %v2805_v54, %v2805_v54  ;;  %v3500_v27 = vrot.slane %v6193_v39, %v3499_v25 }
 0x28e   : > { %3188 = vmatprep.mubr.bf16.mxu1 %v2807_v55 }
 0x28f   : > { %3189 = vmatmul.mubr.bf16.vlgmr.msra.gmra.mrb[4].mxu1 %v2806_v57 }
 0x290   : > { %4144 = vmatpush3.bf16.msra.mxu1 %v4837_v56  ;;  %3229 = vmatprep.mubr.bf16.mxu1 %v2807_v55  ;;  %v4870_v56 = vld [vmem:[%s6409_s4] ss:$8 sps:$4 sm:$0xff]  }
 0x291   : > { %4145 = vmatprep.subr.bf16.mxu1 %v4838_v58  ;;  %v4875_v58 = vld [vmem:[%s6409_s4 + $0x14] ss:$8 sps:$4 sm:$0xff]  }
 0x294   : > { %4146 = vmatpush3.bf16.msra.mxu1 %v4839_v59  ;;  %v4873_v59 = vld [vmem:[%s6409_s4 + $0x10] ss:$8 sps:$4 sm:$0xff]  }
 0x295   : > { %4147 = vmatprep.subr.bf16.mxu1 %v4840_v60  ;;  %v4878_v60 = vld [vmem:[%s6409_s4 + $0x24] ss:$8 sps:$4 sm:$0xff]  }
 0x298   : > { %4148 = vmatpush3.bf16.msra.mxu1 %v4841_v61  ;;  %v4876_v61 = vld [vmem:[%s6409_s4 + $0x20] ss:$8 sps:$4 sm:$0xff]  }
 0x299   : > { %4149 = vmatprep.subr.bf16.mxu1 %v4842_v62  ;;  %v4881_v62 = vld [vmem:[%s6409_s4 + $0x34] ss:$8 sps:$4 sm:$0xff]  }
 0x29c   : > { %4150 = vmatpush3.bf16.msra.mxu1 %v4843_v63  ;;  %v4879_v63 = vld [vmem:[%s6409_s4 + $0x30] ss:$8 sps:$4 sm:$0xff]  }
 0x29d   : > { %4151 = vmatprep.subr.bf16.mxu1 %v4844_v0  ;;  %v4884_v0 = vld [vmem:[%s6409_s4 + $0x44] ss:$8 sps:$4 sm:$0xff]  }
 0x2a0   : > { %4152 = vmatpush3.bf16.msra.mxu1 %v4845_v1  ;;  %v4882_v1 = vld [vmem:[%s6409_s4 + $0x40] ss:$8 sps:$4 sm:$0xff]  }
 0x2a1   : > { %4153 = vmatprep.subr.bf16.mxu1 %v4846_v2  ;;  %v4887_v2 = vld [vmem:[%s6409_s4 + $0x54] ss:$8 sps:$4 sm:$0xff]  }
 0x2a4   : > { %4154 = vmatpush3.bf16.msra.mxu1 %v4847_v3  ;;  %v4885_v3 = vld [vmem:[%s6409_s4 + $0x50] ss:$8 sps:$4 sm:$0xff]  }
 0x2a5   : > { %4155 = vmatprep.subr.bf16.mxu1 %v4848_v4  ;;  %v4890_v4 = vld [vmem:[%s6409_s4 + $0x64] ss:$8 sps:$4 sm:$0xff]  }
 0x2a8   : > { %4156 = vmatpush3.bf16.msra.mxu1 %v4849_v5  ;;  %v4888_v5 = vld [vmem:[%s6409_s4 + $0x60] ss:$8 sps:$4 sm:$0xff]  }
 0x2a9   : > { %4157 = vmatprep.subr.bf16.mxu1 %v4850_v6  ;;  %v4893_v6 = vld [vmem:[%s6409_s4 + $0x74] ss:$8 sps:$4 sm:$0xff]  }
 0x2ac   : > { %4158 = vmatpush3.bf16.msra.mxu1 %v4851_v7  ;;  %v4891_v7 = vld [vmem:[%s6409_s4 + $0x70] ss:$8 sps:$4 sm:$0xff]  }
 0x2ad   : > { %4165 = vmatprep.subr.bf16.mxu1 %v4852_v8  ;;  %v4960_v8 = vmov 0  }
 0x2af   : > { %3230 = vmatmul.mubr.bf16.vlgmr.msra.gmra.mrb[8].mxu1 %v2806_v57  ;;  %v4872_v57 = vld [vmem:[%s6409_s4 + $0x4] ss:$8 sps:$4 sm:$0xff]  }
 0x2b0   : > { %4166 = vmatpush3.bf16.msra.mxu1 %v4853_v9 }
 0x2b1   : > { %4167 = vmatprep.subr.bf16.mxu1 %v4854_v10 }
 0x2b4   : > { %4168 = vmatpush3.bf16.msra.mxu1 %v4855_v11 }
 0x2b5   : > { %4169 = vmatprep.subr.bf16.mxu1 %v4856_v12 }
 0x2b8   : > { %4170 = vmatpush3.bf16.msra.mxu1 %v4857_v13 }
 0x2b9   : > { %4171 = vmatprep.subr.bf16.mxu1 %v4858_v14  ;;  %v3281_v14 = vsub.s32 2, %v6187_v37 }
 0x2bc   : > { %4172 = vmatpush3.bf16.msra.mxu1 %v4859_v15  ;;  %v3282_v15 = vrot.slane %v6193_v39, %v3281_v14 }
 0x2bd   : > { %4173 = vmatprep.subr.bf16.mxu1 %v4860_v16 }
 0x2c0   : > { %4174 = vmatpush3.bf16.msra.mxu1 %v4861_v17 }
 0x2c1   : > { %4175 = vmatprep.subr.bf16.mxu1 %v4862_v18 }
 0x2c4   : > { %4176 = vmatpush3.bf16.msra.mxu1 %v4863_v19 }
 0x2c5   : > { %4177 = vmatprep.subr.bf16.mxu1 %v4864_v20 }
 0x2c8   : > { %4178 = vmatpush3.bf16.msra.mxu1 %v4865_v21 }
 0x2c9   : > { %4179 = vmatprep.subr.bf16.mxu1 %v4866_v22 }
 0x2cc   : > { %4180 = vmatpush3.bf16.msra.mxu1 %v4867_v23 }
 0x2cd   : > { %4190 = vmatprep.subr.bf16.mxu1 %v4958_v24 }
 0x362   : > { %v3190_v31 = vpop.f32.mrb[4].mxu1 }
 0x363   : > { %v3191_v32 = vadd.f32 %v3190_v31, %v2891_v29  ;;  %v3192_v33 = vpop.f32.mrb[5].mxu1 }
 0x364   : > { %v3193_v34 = vadd.f32 %v3192_v33, %v2895_v30  ;;  %v3194_v35 = vpop.f32.mrb[6].mxu1 }
 0x365   : > { %v3237_v36 = vmax.f32 %v3191_v32, 0.0  ;;  %v3195_v38 = vpop.f32.mrb[7].mxu1 }
 0x366   : > { %v3238_v40 = vmax.f32 %v3193_v34, 0.0 }
 0x367   : > { %v3240_v43 = vpack.c.bf16 %v3237_v36, %v3237_v36 }
 0x368   : > { %v3241_v41 = vpack.c.bf16 %v3238_v40, %v3238_v40 }
 0x36a   : > { %3427 = vmatprep.mubr.bf16.mxu1 %v3241_v41 }
 0x36b   : > { %3428 = vmatmul.mubr.bf16.vlgmr.msra.gmra.mrb[12].mxu1 %v3240_v43 }
 0x36c   : > { %4191 = vmatpush3.bf16.msra.mxu1 %v4868_v42  ;;  %4194 = vmatprep.mubr.msk.bf16.mxu1 %vm4959_vm2, %v4958_v24 }
 0x36d   : > { %4192 = vmatprep.subr.bf16.mxu1 %v4958_v24  ;;  %v3495_v24 = vsub.s32 3, %v6187_v37 }
 0x36f   : > { %v3496_v26 = vrot.slane %v6193_v39, %v3495_v24  ;;  %v3510_v29 = vrot.slane %v3500_v27, %v3495_v24 }
 0x370   : > { %4193 = vmatpush3.bf16.msra.mxu1 %v4869_v44 }
 0x371   : > { %3591 = vmatprep.subr.bf16.mxu1 %v4872_v57  ;;  %v3506_v28 = vrot.slane %v3496_v26, %v3495_v24 }
 0x382   : > { %v4159_v47 = vpop.f32.mrb[8].mxu1 }
 0x383   : > { %v4160_v49 = vpop.f32.mrb[9].mxu1 }
 0x384   : > { %v4161_v50 = vadd.f32 %v4160_v49, %v4159_v47  ;;  %v4162_v51 = vpop.f32.mrb[10].mxu1 }
 0x385   : > { %v4163_v52 = vpop.f32.mrb[11].mxu1 }
 0x386   : > { %v3232_v53 = vadd.f32 %v4161_v50, %v2899_v48 }
 0x388   : > { %v3239_v54 = vmax.f32 %v3232_v53, 0.0 }
 0x38a   : > { %v3242_v55 = vpack.c.bf16 %v3239_v54, %v3239_v54 }
 0x38c   : > { %4195 = vmatmul.mubr.msk.bf16.vlgmr.msra.gmra.mrb[16].mxu1 %vm3391_vm3, %v3242_v55 }
 0x38d   : > { %3592 = vmatpush1.bf16.msra.mxu1 %v4870_v56  ;;  %3623 = vmatprep.mubr.bf16.mxu1 %v4960_v8 }
 0x38e   : > { %3593 = vmatprep.subr.bf16.mxu1 %v4875_v58 }
 0x391   : > { %3594 = vmatpush1.bf16.msra.mxu1 %v4873_v59 }
 0x392   : > { %3595 = vmatprep.subr.bf16.mxu1 %v4878_v60 }
 0x395   : > { %3596 = vmatpush1.bf16.msra.mxu1 %v4876_v61 }
 0x396   : > { %3597 = vmatprep.subr.bf16.mxu1 %v4881_v62 }
 0x399   : > { %3598 = vmatpush1.bf16.msra.mxu1 %v4879_v63 }
 0x39a   : > { %3599 = vmatprep.subr.bf16.mxu1 %v4884_v0 }
 0x39d   : > { %3600 = vmatpush1.bf16.msra.mxu1 %v4882_v1 }
 0x39e   : > { %3601 = vmatprep.subr.bf16.mxu1 %v4887_v2 }
 0x3a1   : > { %3602 = vmatpush1.bf16.msra.mxu1 %v4885_v3 }
 0x3a2   : > { %3603 = vmatprep.subr.bf16.mxu1 %v4890_v4 }
 0x3a5   : > { %3604 = vmatpush1.bf16.msra.mxu1 %v4888_v5 }
 0x3a6   : > { %3605 = vmatprep.subr.bf16.mxu1 %v4893_v6 }
 0x3a9   : > { %3606 = vmatpush1.bf16.msra.mxu1 %v4891_v7 }
 0x43e   : > { %v4181_v9 = vpop.f32.mrb[12].mxu1 }
 0x43f   : > { %v4182_v10 = vpop.f32.mrb[13].mxu1 }
 0x440   : > { %v4183_v11 = vadd.f32 %v4182_v10, %v4181_v9  ;;  %v4184_v12 = vpop.f32.mrb[14].mxu1 }
 0x441   : > { %v4185_v13 = vpop.f32.mrb[15].mxu1 }
 0x442   : > { %v3430_v16 = vadd.f32 %v4183_v11, %v3282_v15 }
 0x45f   : > { %v3469_v17 = vpop.f32.mrb[16].mxu1 }
 0x460   : > { %v3470_v18 = vadd.f32 %v3469_v17, %v3430_v16  ;;  %v4196_v19 = vpop.f32.mrb[17].mxu1 }
 0x461   : > { %v3472_v20 = vpop.f32.mrb[18].mxu1 }
 0x462   : > { %v3475_v21 = vmax.f32 %v3470_v18, 0.0  ;;  %v4197_v22 = vpop.f32.mrb[19].mxu1 }
 0x464   : > { %v3476_v23 = vpack.c.bf16 %v3475_v21, %v3475_v21 }
 0x466   : > { %3624 = vmatmul.mubr.bf16.vlgmr.msra.gmra.mrb[20].mxu1 %v3476_v23 }
 0x539   : > { %v3625_v30 = vpop.f32.mrb[20].mxu1 }
 0x53a   : > { %v3626_v31 = vadd.f32 %v3625_v30, %v3506_v28  ;;  %v3627_v32 = vpop.f32.mrb[21].mxu1 }
 0x53b   : > { %v3628_v33 = vadd.f32 %v3627_v32, %v3510_v29  ;;  %v3629_v34 = vpop.f32.mrb[22].mxu1 }
 0x53c   : > { %3632 = vst [vmem:[%s244_s28] sm:$0xff] %v3626_v31  ;;  %v3630_v37 = vpop.f32.mrb[23].mxu1 }
 0x53d   : > { %3633 = vst [vmem:[%s244_s28 + $0x8] sm:$0xff] %v3628_v33 }
 0x53e   : > { %4907 = shalt.err (!%p4904_p3)
}
 0x53f   : > { %s4908_s11 = scalar_lea.hbm %s6363_s10, 256  ;;  %s4912_s13 = scalar_lea.hbm %s6411_s6, 512 }
 0x540   : > { %p4909_p4 = scmp.ne.s32.totalorder %s6363_s10, %s4908_s11  ;;  %p4913_p9 = scmp.lt.u32.totalorder %s6363_s10, %s6411_s6 }
 0x541   : > { %p4914_p10 = scmp.lt.u32.totalorder %s4912_s13, %s4908_s11  ;;  %p4916_p12 = scmp.lt.u32.totalorder %s4908_s11, %s6363_s10 }
 0x542   : > { %p4910_p7 = pnand %p4909_p4, %p5035_p5 }
 0x543   : > { %p4915_p11 = por %p4914_p10, %p4913_p9 }
 0x544   : > { %p4911_p8 = pneg %p4910_p7 }
 0x545   : > { %p4917_p13 = por %p4916_p12, %p4915_p11 }
 0x547   : > { %p4918_p0 = pnand %p4917_p13, %p4911_p8 }
 0x549   : > { %4921 = shalt.err (!%p4918_p0)
}
 0x54a   : > { %4239 = dma.vmem_to_hbm [thread:$0]  (%p5035_p5), %s6365_s26, 256, %s6363_s10, %s3635_s25  }
 0x54b PF: > { %p4245_p1 = scmp.ge.s32.totalorder %s4956_s24, 2  ;;  %s3661_s28 = sand.u32 1, %s4944_s21  }
 0x54c   : > { %s3662_s29 = scalar_lea.sflag [#allocation3], %s3661_s28 }
 0x54d   : > { %p4242_p2 = pnand %p4245_p1, %p5039_p6 }
 0x54f   : > { %4939 = dma.done.wait (!%p4242_p2), %s3662_s29, 256  }
 0x550   : > { %4941 = vsyncadd (!%p4242_p2), %s3662_s29, 4294967040  ;;  %p16_p3 = scmp.ge.s32.totalorder %s5022_s27, 4   ;;  %s6414_s21 = smov %s4948_s22 }
 0x551   : > { %s6415_s22 = smov %s4952_s23  ;;  %s6416_s23 = smov %s5033_s30 }
 0x552   : > { %s6417_s24 = smov %s5022_s27  ;;  %18 = sbr.rel (!%p16_p3) target bundleno = 3 (0x3), region = 79 }
 0x559   :  { %3667 = vsyncpa [#allocation3], 1 }
 0x55a   :  { %3669 = vsyncpa [#allocation3 + $0x1], 1 }

</bundles_post_ra>
